<compile_context>
chip_gen: v7x
topology: tpu7x:2x2x1
jax: 0.10.0
libtpu: 0.0.40
codegen_flags: <defaults>
</compile_context>

<pallas_src>
import functools
import math

import jax
import jax.numpy as jnp
from jax.experimental import pallas as pl
from jax.experimental.pallas import tpu as pltpu

LN_EPS = 1e-5        # nn.LayerNorm default eps
NEG_INF = -1e30      # finite mask value (safe: causal diagonal is always unmasked)


# ---------------------------------------------------------------------------
# small math helpers (run inside kernels, all f32)
# ---------------------------------------------------------------------------
def _layernorm(x, gamma, beta):
    mu = jnp.mean(x, axis=-1, keepdims=True)
    var = jnp.mean(jnp.square(x - mu), axis=-1, keepdims=True)
    return (x - mu) * jax.lax.rsqrt(var + LN_EPS) * gamma + beta


def _erf(x):
    # Abramowitz & Stegun 7.1.26: |abs err| <= 1.5e-7 (~f32 eps); uses exp (EUP).
    a1, a2, a3, a4, a5 = (0.254829592, -0.284496736, 1.421413741,
                          -1.453152027, 1.061405429)
    p = 0.3275911
    sgn = jnp.where(x >= 0.0, 1.0, -1.0)
    z = jnp.abs(x)
    t = 1.0 / (1.0 + p * z)
    poly = ((((a5 * t + a4) * t + a3) * t + a2) * t + a1) * t
    return sgn * (1.0 - poly * jnp.exp(-z * z))


def _gelu_exact(x):
    # nn.GELU() default (exact erf form), to ~f32 precision.
    return 0.5 * x * (1.0 + _erf(x * 0.7071067811865476))


# ---------------------------------------------------------------------------
# tile-size / compiler-params helpers
# ---------------------------------------------------------------------------
def _row_tile(n, target):
    cap = min(n, target)
    t = cap - (cap % 8)
    while t >= 8:
        if n % t == 0:
            return t
        t -= 8
    return n


def _col_tile(n, target):
    t = min(n, target)
    t -= t % 128
    while t >= 128:
        if n % t == 0:
            return t
        t -= 128
    return n


_VMEM_LIMIT = None


def _vmem_limit_bytes():
    # ~85% of physical VMEM (v5e/v6e: ~108 MiB, v7x: ~54 MiB); safe fallback 48 MiB.
    global _VMEM_LIMIT
    if _VMEM_LIMIT is None:
        limit = 48 * 1024 * 1024
        try:
            cap = getattr(pltpu.get_tpu_info(), "vmem_capacity_bytes", None)
            if cap:
                limit = int(cap * 0.85)
        except Exception:
            pass
        _VMEM_LIMIT = limit
    return _VMEM_LIMIT


def _cp(sem):
    return pltpu.CompilerParams(dimension_semantics=sem,
                                vmem_limit_bytes=_vmem_limit_bytes())


def _const_spec(shape):
    """Whole-array block with constant (0,...) index -> single-buffered weight."""
    idx = lambda *_: (0,) * len(shape)
    try:
        return pl.BlockSpec(shape, idx, pipeline_mode=pl.Buffered(1))
    except Exception:  # older API without pipeline_mode: fall back to default buffering
        return pl.BlockSpec(shape, idx)


# ---------------------------------------------------------------------------
# Kernel 1: LN1 + fused QKV projection (one (tm,D)@(D,3D) matmul).
#           q/k/v are emitted in (B, S, D) layout as bf16 (lane-dense stores).
#           ResFormer value residual (v + v_first) fused here (skipped on layer 0).
# ---------------------------------------------------------------------------
def qkv_kernel(add_vfirst, *refs):
    if add_vfirst:
        (x_ref, vf_ref, g_ref, b_ref, wqkv_ref, bqkv_ref,
         q_out, k_out, v_out) = refs
    else:
        (x_ref, g_ref, b_ref, wqkv_ref, bqkv_ref,
         q_out, k_out, v_out) = refs
        vf_ref = None

    x = x_ref[0]                                           # (tm, D) f32
    D = x.shape[-1]
    h = _layernorm(x, g_ref[...], b_ref[...]).astype(jnp.bfloat16)
    qkv = jnp.dot(h, wqkv_ref[...],
                  preferred_element_type=jnp.float32) + bqkv_ref[...]

    q_out[0] = qkv[:, :D].astype(jnp.bfloat16)
    k_out[0] = qkv[:, D:2 * D].astype(jnp.bfloat16)
    v = qkv[:, 2 * D:]
    if add_vfirst:
        v = v + vf_ref[0].astype(jnp.float32)              # ResFormer value residual
    v_out[0] = v.astype(jnp.bfloat16)                      # layer 0: v_first is zero


def qkv_proj(x, v_first, p):
    B, S, D = x.shape
    tm = _row_tile(S, 512)
    grid = (B, S // tm)

    row_spec = pl.BlockSpec((1, tm, D), lambda b, r: (b, r, 0))
    out_shape = tuple(jax.ShapeDtypeStruct((B, S, D), jnp.bfloat16) for _ in range(3))
    out_specs = (row_spec, row_spec, row_spec)

    if v_first is None:
        kernel = functools.partial(qkv_kernel, False)
        in_specs = [row_spec, _const_spec((1, D)), _const_spec((1, D)),
                    _const_spec((D, 3 * D)), _const_spec((1, 3 * D))]
        args = (x, p['ln1_g'], p['ln1_b'], p['wqkv'], p['bqkv'])
    else:
        kernel = functools.partial(qkv_kernel, True)
        in_specs = [row_spec, row_spec, _const_spec((1, D)), _const_spec((1, D)),
                    _const_spec((D, 3 * D)), _const_spec((1, 3 * D))]
        args = (x, v_first, p['ln1_g'], p['ln1_b'], p['wqkv'], p['bqkv'])

    return pl.pallas_call(
        kernel, out_shape=out_shape, grid=grid,
        in_specs=in_specs, out_specs=out_specs,
        compiler_params=_cp(("parallel", "parallel")),
    )(*args)


# ---------------------------------------------------------------------------
# Kernel 2: flash-style causal attention over (batch, q_tile, kv_tile).
#           Full-D (all heads) blocks, heads split with lane slices in-register,
#           online softmax in VMEM scratch, masked kv tiles skip compute AND DMA.
# ---------------------------------------------------------------------------
def flash_kernel(num_heads, scale, q_ref, k_ref, v_ref, o_ref, m_ref, l_ref, acc_ref):
    qi = pl.program_id(1)
    ki = pl.program_id(2)
    tq = q_ref.shape[1]
    tk = k_ref.shape[1]

    @pl.when(ki == 0)
    def _():
        m_ref[...] = jnp.full(m_ref.shape, NEG_INF, jnp.float32)
        l_ref[...] = jnp.zeros(l_ref.shape, jnp.float32)
        acc_ref[...] = jnp.zeros(acc_ref.shape, jnp.float32)

    # Tiles entirely above the causal diagonal are skipped (tq == tk); their DMA is
    # also elided because the kv index_map is clamped to min(qi, ki).
    @pl.when(ki <= qi)
    def _():
        q = q_ref[0]                                       # (tq, D) bf16
        k = k_ref[0]
        v = v_ref[0]
        D = q.shape[-1]
        hd = D // num_heads

        q_ids = qi * tq + jax.lax.broadcasted_iota(jnp.int32, (tq, tk), 0)
        k_ids = ki * tk + jax.lax.broadcasted_iota(jnp.int32, (tq, tk), 1)
        causal = q_ids >= k_ids

        for h in range(num_heads):                         # static lane slices
            sl = slice(h * hd, (h + 1) * hd)
            s = jax.lax.dot_general(q[:, sl], k[:, sl], (((1,), (1,)), ((), ())),
                                    preferred_element_type=jnp.float32) * scale
            s = jnp.where(causal, s, NEG_INF)

            m_prev = m_ref[:, h:h + 1]
            m_new = jnp.maximum(m_prev, jnp.max(s, axis=-1, keepdims=True))
            alpha = jnp.exp(m_prev - m_new)
            p = jnp.exp(s - m_new)
            # l replicated across this head's hd lanes -> dense epilogue store.
            l_ref[:, sl] = alpha * l_ref[:, sl] + jnp.sum(p, axis=-1, keepdims=True)
            acc_ref[:, sl] = alpha * acc_ref[:, sl] + jnp.dot(
                p.astype(v.dtype), v[:, sl], preferred_element_type=jnp.float32)
            m_ref[:, h:h + 1] = m_new

    @pl.when(ki == pl.num_programs(2) - 1)
    def _():
        o_ref[0] = (acc_ref[...] *
                    pl.reciprocal(l_ref[...], approx=True)).astype(o_ref.dtype)


def flash_attention(q, k, v, num_heads):
    B, S, D = q.shape
    hd = D // num_heads
    t = _row_tile(S, 256)                                  # tq == tk
    grid = (B, S // t, S // t)

    q_spec = pl.BlockSpec((1, t, D), lambda b, qi, ki: (b, qi, 0))
    kv_spec = pl.BlockSpec((1, t, D), lambda b, qi, ki: (b, jnp.minimum(qi, ki), 0))
    o_spec = pl.BlockSpec((1, t, D), lambda b, qi, ki: (b, qi, 0))

    kernel = functools.partial(flash_kernel, num_heads, 1.0 / math.sqrt(hd))
    return pl.pallas_call(
        kernel,
        out_shape=jax.ShapeDtypeStruct((B, S, D), jnp.bfloat16),
        grid=grid,
        in_specs=[q_spec, kv_spec, kv_spec],
        out_specs=o_spec,
        scratch_shapes=[pltpu.VMEM((t, num_heads), jnp.float32),   # running max
                        pltpu.VMEM((t, D), jnp.float32),           # running sum (rep.)
                        pltpu.VMEM((t, D), jnp.float32)],          # output acc
        compiler_params=_cp(("parallel", "parallel", "arbitrary")),
    )(q, k, v)


# ---------------------------------------------------------------------------
# Kernel 3: fused out-projection + attn residual + LN2 + MLP(GELU) + ff residual.
#           d_ff is tiled on the last ("arbitrary") grid axis; y / LN2(y) / the MLP
#           accumulator live in VMEM scratch so nothing round-trips HBM.
# ---------------------------------------------------------------------------
def post_block_kernel(x_ref, a_ref, wo_ref, bo_ref, g2_ref, beta2_ref,
                      w1_ref, b1_ref, w2_ref, b2_ref, out_ref,
                      y_ref, hn_ref, acc_ref):
    f = pl.program_id(2)

    @pl.when(f == 0)
    def _():
        y = (x_ref[0]
             + jnp.dot(a_ref[0], wo_ref[...], preferred_element_type=jnp.float32)
             + bo_ref[...])                                # dropout = identity (eval)
        y_ref[...] = y
        hn_ref[...] = _layernorm(y, g2_ref[...], beta2_ref[...]).astype(jnp.bfloat16)
        acc_ref[...] = jnp.zeros_like(acc_ref)

    pre = jnp.dot(hn_ref[...], w1_ref[...],
                  preferred_element_type=jnp.float32) + b1_ref[...]
    acc_ref[...] += jnp.dot(_gelu_exact(pre).astype(jnp.bfloat16), w2_ref[...],
                            preferred_element_type=jnp.float32)

    @pl.when(f == pl.num_programs(2) - 1)
    def _():
        out_ref[0] = y_ref[...] + acc_ref[...] + b2_ref[...]   # ff residual


def post_block(x, attn, p):
    B, S, D = x.shape
    F = p['w1'].shape[1]
    tm = _row_tile(S, 512)
    tf = _col_tile(F, 1024)
    grid = (B, S // tm, F // tf)

    row_spec = pl.BlockSpec((1, tm, D), lambda b, r, f: (b, r, 0))
    in_specs = [row_spec,                                       # x (f32 residual)
                row_spec,                                       # attn out (bf16)
                _const_spec((D, D)),                            # wo
                _const_spec((1, D)),                            # bo
                _const_spec((1, D)), _const_spec((1, D)),       # ln2 gamma/beta
                pl.BlockSpec((D, tf), lambda b, r, f: (0, f)),  # w1 tile
                pl.BlockSpec((1, tf), lambda b, r, f: (0, f)),  # b1 tile
                pl.BlockSpec((tf, D), lambda b, r, f: (f, 0)),  # w2 tile
                _const_spec((1, D))]                            # b2

    return pl.pallas_call(
        post_block_kernel,
        out_shape=jax.ShapeDtypeStruct((B, S, D), jnp.float32),
        grid=grid,
        in_specs=in_specs,
        out_specs=row_spec,
        scratch_shapes=[pltpu.VMEM((tm, D), jnp.float32),       # y (attn residual out)
                        pltpu.VMEM((tm, D), jnp.bfloat16),      # LN2(y) matmul operand
                        pltpu.VMEM((tm, D), jnp.float32)],      # MLP accumulator
        compiler_params=_cp(("parallel", "parallel", "arbitrary")),
    )(x, attn, p['wo'], p['bo'], p['ln2_g'], p['ln2_b'],
      p['w1'], p['b1'], p['w2'], p['b2'])


# ---------------------------------------------------------------------------
# Kernel 4a: final LayerNorm, once per token row (hoisted out of the lm_head).
# ---------------------------------------------------------------------------
def final_ln_kernel(x_ref, g_ref, b_ref, o_ref):
    o_ref[...] = _layernorm(x_ref[...], g_ref[...], b_ref[...]).astype(o_ref.dtype)


def final_layernorm(x2, g, b):
    BS, D = x2.shape
    tm = _row_tile(BS, 512)
    return pl.pallas_call(
        final_ln_kernel,
        out_shape=jax.ShapeDtypeStruct((BS, D), jnp.bfloat16),
        grid=(BS // tm,),
        in_specs=[pl.BlockSpec((tm, D), lambda i: (i, 0)),
                  _const_spec((1, D)), _const_spec((1, D))],
        out_specs=pl.BlockSpec((tm, D), lambda i: (i, 0)),
        compiler_params=_cp(("parallel",)),
    )(x2, g, b)


# ---------------------------------------------------------------------------
# Kernel 4b: tied lm_head, grid = (vocab outer, rows inner) so the embedding
#            matrix is streamed from HBM exactly once; contracts against emb's
#            last dim (no transposed (V, D) copy).
# ---------------------------------------------------------------------------
def lm_head_kernel(xn_ref, emb_ref, out_ref):
    out_ref[...] = jax.lax.dot_general(
        xn_ref[...], emb_ref[...], (((1,), (1,)), ((), ())),
        preferred_element_type=jnp.float32)


def lm_head(xn, emb):
    BS, D = xn.shape
    V = emb.shape[0]
    tm = _row_tile(BS, 512)
    tv = _col_tile(V, 2048)
    grid = (V // tv, BS // tm)                              # vocab outer, rows inner
    return pl.pallas_call(
        lm_head_kernel,
        out_shape=jax.ShapeDtypeStruct((BS, V), jnp.float32),
        grid=grid,
        in_specs=[pl.BlockSpec((tm, D), lambda j, i: (i, 0)),
                  pl.BlockSpec((tv, D), lambda j, i: (j, 0))],
        out_specs=pl.BlockSpec((tm, tv), lambda j, i: (i, j)),
        compiler_params=_cp(("parallel", "parallel")),
    )(xn, emb)


# ---------------------------------------------------------------------------
# Parameter init (GPT-2 style: normal(0, 0.02) Linear/Embedding, LN = (1, 0)).
# Matmul weights stored bf16 (MXU operands + halved DMA); biases/LN params f32.
# ---------------------------------------------------------------------------
def init_params(key, vocab_size, d_model, num_layers, d_ff):
    std = 0.02
    keys = jax.random.split(key, 1 + num_layers)

    def lin(k, fan_in, fan_out):
        w = jax.random.normal(k, (fan_in, fan_out), jnp.float32) * std
        return w.astype(jnp.bfloat16)

    emb = (jax.random.normal(keys[0], (vocab_size, d_model), jnp.float32) * std
           ).astype(jnp.bfloat16)

    layers = []
    for li in range(num_layers):
        lk = jax.random.split(keys[1 + li], 4)
        layers.append(dict(
            ln1_g=jnp.ones((1, d_model), jnp.float32),
            ln1_b=jnp.zeros((1, d_model), jnp.float32),
            wqkv=lin(lk[0], d_model, 3 * d_model),              # fused q|k|v weight
            bqkv=jnp.zeros((1, 3 * d_model), jnp.float32),
            wo=lin(lk[1], d_model, d_model),
            bo=jnp.zeros((1, d_model), jnp.float32),
            ln2_g=jnp.ones((1, d_model), jnp.float32),
            ln2_b=jnp.zeros((1, d_model), jnp.float32),
            w1=lin(lk[2], d_model, d_ff),
            b1=jnp.zeros((1, d_ff), jnp.float32),
            w2=lin(lk[3], d_ff, d_model),
            b2=jnp.zeros((1, d_model), jnp.float32),
        ))
    return dict(emb=emb, layers=layers,
                ln_f_g=jnp.ones((1, d_model), jnp.float32),
                ln_f_b=jnp.zeros((1, d_model), jnp.float32))


# ---------------------------------------------------------------------------
# Full forward pass
# ---------------------------------------------------------------------------
def gpt2_resv_forward(params, input_ids, num_heads):
    emb = params['emb']
    x = emb[input_ids].astype(jnp.float32)                 # token-embedding gather (XLA)
    B, S, D = x.shape
    assert D % num_heads == 0

    v_first = None                                         # layer 0: skip the zero add
    for li, lp in enumerate(params['layers']):
        q, k, v = qkv_proj(x, v_first, lp)                 # (B, S, D) bf16 each
        if li == 0:
            v_first = v                                    # layer-0 value shared later
        attn = flash_attention(q, k, v, num_heads)         # (B, S, D) bf16
        x = post_block(x, attn, lp)                        # (B, S, D) f32

    xn = final_layernorm(x.reshape(B * S, D),
                         params['ln_f_g'], params['ln_f_b'])        # (B*S, D) bf16
    logits = lm_head(xn, emb)                              # tied weights, (B*S, V) f32
    return logits.reshape(B, S, emb.shape[0])


if __name__ == "__main__":
    vocab_size, d_model, num_heads, num_layers, d_ff = 64, 32, 4, 2, 128
    B, S = 2, 8

    key = jax.random.PRNGKey(0)
    pkey, ikey = jax.random.split(key)
    params = init_params(pkey, vocab_size, d_model, num_layers, d_ff)
    input_ids = jax.random.randint(ikey, (B, S), 0, vocab_size, dtype=jnp.int32)

    fwd = jax.jit(functools.partial(gpt2_resv_forward, num_heads=num_heads))
    logits = fwd(params, input_ids)
    jax.block_until_ready(logits)

    assert logits.shape == (B, S, vocab_size), logits.shape
    assert bool(jnp.all(jnp.isfinite(logits)))
    print("KERNEL_OK")
</pallas_src>

<mosaic_0001>
module attributes {stable_mosaic.version = 11 : i64} {
  func.func @qkv_kernel(%arg0: i32, %arg1: i32, %arg2: memref<1x8x32xf32, #tpu.memory_space<vmem>>, %arg3: memref<1x32xf32, #tpu.memory_space<vmem>>, %arg4: memref<1x32xf32, #tpu.memory_space<vmem>>, %arg5: memref<32x96xbf16, #tpu.memory_space<vmem>>, %arg6: memref<1x96xf32, #tpu.memory_space<vmem>>, %arg7: memref<1x8x32xbf16, #tpu.memory_space<vmem>>, %arg8: memref<1x8x32xbf16, #tpu.memory_space<vmem>>, %arg9: memref<1x8x32xbf16, #tpu.memory_space<vmem>>) attributes {dimension_semantics = [#tpu.dimension_semantics<parallel>, #tpu.dimension_semantics<parallel>], iteration_bounds = array<i64: 2, 1>, scalar_prefetch = 0 : i64, scratch_operands = 0 : i64, tpu.core_type = #tpu.core_type<tc>, window_params = [{transform_indices = @transform_0, window_bounds = array<i64: 1, 8, 32>}, {pipeline_mode = #tpu.pipeline_mode<synchronous>, transform_indices = @transform_1, window_bounds = array<i64: 1, 32>}, {pipeline_mode = #tpu.pipeline_mode<synchronous>, transform_indices = @transform_2, window_bounds = array<i64: 1, 32>}, {pipeline_mode = #tpu.pipeline_mode<synchronous>, transform_indices = @transform_3, window_bounds = array<i64: 32, 96>}, {pipeline_mode = #tpu.pipeline_mode<synchronous>, transform_indices = @transform_4, window_bounds = array<i64: 1, 96>}, {transform_indices = @transform_5, window_bounds = array<i64: 1, 8, 32>}, {transform_indices = @transform_6, window_bounds = array<i64: 1, 8, 32>}, {transform_indices = @transform_7, window_bounds = array<i64: 1, 8, 32>}]} {
    %c0 = arith.constant 0 : index
    %c0_0 = arith.constant 0 : index
    %c0_1 = arith.constant 0 : index
    %0 = vector.load %arg2[%c0, %c0_0, %c0_1] : memref<1x8x32xf32, #tpu.memory_space<vmem>>, vector<1x8x32xf32>
    %1 = vector.shape_cast %0 : vector<1x8x32xf32> to vector<8x32xf32>
    %c0_2 = arith.constant 0 : index
    %c0_3 = arith.constant 0 : index
    %2 = vector.load %arg3[%c0_2, %c0_3] : memref<1x32xf32, #tpu.memory_space<vmem>>, vector<1x32xf32>
    %c0_4 = arith.constant 0 : index
    %c0_5 = arith.constant 0 : index
    %3 = vector.load %arg4[%c0_4, %c0_5] : memref<1x32xf32, #tpu.memory_space<vmem>>, vector<1x32xf32>
    %cst = arith.constant dense<0.000000e+00> : vector<8xf32>
    %4 = vector.multi_reduction <add>, %1, %cst [1] : vector<8x32xf32> to vector<8xf32>
    %5 = vector.shape_cast %4 : vector<8xf32> to vector<8x1xf32>
    %cst_6 = arith.constant 3.200000e+01 : f32
    %6 = vector.broadcast %cst_6 : f32 to vector<8x1xf32>
    %7 = arith.divf %5, %6 : vector<8x1xf32>
    %8 = vector.broadcast %7 : vector<8x1xf32> to vector<8x32xf32>
    %9 = arith.subf %1, %8 : vector<8x32xf32>
    %10 = arith.mulf %9, %9 : vector<8x32xf32>
    %cst_7 = arith.constant dense<0.000000e+00> : vector<8xf32>
    %11 = vector.multi_reduction <add>, %10, %cst_7 [1] : vector<8x32xf32> to vector<8xf32>
    %12 = vector.shape_cast %11 : vector<8xf32> to vector<8x1xf32>
    %cst_8 = arith.constant 3.200000e+01 : f32
    %13 = vector.broadcast %cst_8 : f32 to vector<8x1xf32>
    %14 = arith.divf %12, %13 : vector<8x1xf32>
    %15 = vector.broadcast %7 : vector<8x1xf32> to vector<8x32xf32>
    %16 = arith.subf %1, %15 : vector<8x32xf32>
    %cst_9 = arith.constant 9.99999974E-6 : f32
    %17 = vector.broadcast %cst_9 : f32 to vector<8x1xf32>
    %18 = arith.addf %14, %17 : vector<8x1xf32>
    %19 = math.rsqrt %18 : vector<8x1xf32>
    %20 = vector.broadcast %19 : vector<8x1xf32> to vector<8x32xf32>
    %21 = arith.mulf %16, %20 : vector<8x32xf32>
    %22 = vector.broadcast %2 : vector<1x32xf32> to vector<8x32xf32>
    %23 = arith.mulf %21, %22 : vector<8x32xf32>
    %24 = vector.broadcast %3 : vector<1x32xf32> to vector<8x32xf32>
    %25 = arith.addf %23, %24 : vector<8x32xf32>
    %26 = arith.truncf %25 : vector<8x32xf32> to vector<8x32xbf16>
    %c0_10 = arith.constant 0 : index
    %c0_11 = arith.constant 0 : index
    %27 = vector.load %arg5[%c0_10, %c0_11] : memref<32x96xbf16, #tpu.memory_space<vmem>>, vector<32x96xbf16>
    %cst_12 = arith.constant dense<0.000000e+00> : vector<8x96xf32>
    %28 = tpu.matmul %26, %27, %cst_12 {dimension_numbers = #tpu.dot_dimension_numbers<[1], [0], [0], [1], [0, 0, 1, 1], [], []>} : vector<8x32xbf16>, vector<32x96xbf16>, vector<8x96xf32> -> vector<8x96xf32>
    %c0_13 = arith.constant 0 : index
    %c0_14 = arith.constant 0 : index
    %29 = vector.load %arg6[%c0_13, %c0_14] : memref<1x96xf32, #tpu.memory_space<vmem>>, vector<1x96xf32>
    %30 = vector.broadcast %29 : vector<1x96xf32> to vector<8x96xf32>
    %31 = arith.addf %28, %30 : vector<8x96xf32>
    %32 = vector.extract_strided_slice %31 {offsets = [0, 0], sizes = [8, 32], strides = [1, 1]} : vector<8x96xf32> to vector<8x32xf32>
    %33 = arith.truncf %32 : vector<8x32xf32> to vector<8x32xbf16>
    %c0_15 = arith.constant 0 : index
    %c0_16 = arith.constant 0 : index
    %c0_17 = arith.constant 0 : index
    %34 = vector.load %arg7[%c0_15, %c0_16, %c0_17] : memref<1x8x32xbf16, #tpu.memory_space<vmem>>, vector<1x8x32xbf16>
    %35 = vector.shape_cast %34 : vector<1x8x32xbf16> to vector<8x32xbf16>
    %36 = vector.shape_cast %33 : vector<8x32xbf16> to vector<1x8x32xbf16>
    tpu.vector_store %arg7[%c0_15, %c0_16, %c0_17], %36 {strides = array<i32>} : memref<1x8x32xbf16, #tpu.memory_space<vmem>>, vector<1x8x32xbf16>,
    %37 = vector.extract_strided_slice %31 {offsets = [0, 32], sizes = [8, 32], strides = [1, 1]} : vector<8x96xf32> to vector<8x32xf32>
    %38 = arith.truncf %37 : vector<8x32xf32> to vector<8x32xbf16>
    %c0_18 = arith.constant 0 : index
    %c0_19 = arith.constant 0 : index
    %c0_20 = arith.constant 0 : index
    %39 = vector.load %arg8[%c0_18, %c0_19, %c0_20] : memref<1x8x32xbf16, #tpu.memory_space<vmem>>, vector<1x8x32xbf16>
    %40 = vector.shape_cast %39 : vector<1x8x32xbf16> to vector<8x32xbf16>
    %41 = vector.shape_cast %38 : vector<8x32xbf16> to vector<1x8x32xbf16>
    tpu.vector_store %arg8[%c0_18, %c0_19, %c0_20], %41 {strides = array<i32>} : memref<1x8x32xbf16, #tpu.memory_space<vmem>>, vector<1x8x32xbf16>,
    %42 = vector.extract_strided_slice %31 {offsets = [0, 64], sizes = [8, 32], strides = [1, 1]} : vector<8x96xf32> to vector<8x32xf32>
    %43 = arith.truncf %42 : vector<8x32xf32> to vector<8x32xbf16>
    %c0_21 = arith.constant 0 : index
    %c0_22 = arith.constant 0 : index
    %c0_23 = arith.constant 0 : index
    %44 = vector.load %arg9[%c0_21, %c0_22, %c0_23] : memref<1x8x32xbf16, #tpu.memory_space<vmem>>, vector<1x8x32xbf16>
    %45 = vector.shape_cast %44 : vector<1x8x32xbf16> to vector<8x32xbf16>
    %46 = vector.shape_cast %43 : vector<8x32xbf16> to vector<1x8x32xbf16>
    tpu.vector_store %arg9[%c0_21, %c0_22, %c0_23], %46 {strides = array<i32>} : memref<1x8x32xbf16, #tpu.memory_space<vmem>>, vector<1x8x32xbf16>,
    return
  }
  func.func @transform_0(%arg0: i32, %arg1: i32) -> (i32, i32, i32) {
    %c0_i32 = arith.constant 0 : i32
    %c0_i32_0 = arith.constant 0 : i32
    return %arg0, %arg1, %c0_i32 : i32, i32, i32
  }
  func.func @transform_1(%arg0: i32, %arg1: i32) -> (i32, i32) {
    %c0_i32 = arith.constant 0 : i32
    %c0_i32_0 = arith.constant 0 : i32
    %c0_i32_1 = arith.constant 0 : i32
    return %c0_i32, %c0_i32_0 : i32, i32
  }
  func.func @transform_2(%arg0: i32, %arg1: i32) -> (i32, i32) {
    %c0_i32 = arith.constant 0 : i32
    %c0_i32_0 = arith.constant 0 : i32
    %c0_i32_1 = arith.constant 0 : i32
    return %c0_i32, %c0_i32_0 : i32, i32
  }
  func.func @transform_3(%arg0: i32, %arg1: i32) -> (i32, i32) {
    %c0_i32 = arith.constant 0 : i32
    %c0_i32_0 = arith.constant 0 : i32
    %c0_i32_1 = arith.constant 0 : i32
    return %c0_i32, %c0_i32_0 : i32, i32
  }
  func.func @transform_4(%arg0: i32, %arg1: i32) -> (i32, i32) {
    %c0_i32 = arith.constant 0 : i32
    %c0_i32_0 = arith.constant 0 : i32
    %c0_i32_1 = arith.constant 0 : i32
    return %c0_i32, %c0_i32_0 : i32, i32
  }
  func.func @transform_5(%arg0: i32, %arg1: i32) -> (i32, i32, i32) {
    %c0_i32 = arith.constant 0 : i32
    %c0_i32_0 = arith.constant 0 : i32
    return %arg0, %arg1, %c0_i32 : i32, i32, i32
  }
  func.func @transform_6(%arg0: i32, %arg1: i32) -> (i32, i32, i32) {
    %c0_i32 = arith.constant 0 : i32
    %c0_i32_0 = arith.constant 0 : i32
    return %arg0, %arg1, %c0_i32 : i32, i32, i32
  }
  func.func @transform_7(%arg0: i32, %arg1: i32) -> (i32, i32, i32) {
    %c0_i32 = arith.constant 0 : i32
    %c0_i32_0 = arith.constant 0 : i32
    return %arg0, %arg1, %c0_i32 : i32, i32, i32
  }
}

module attributes {stable_mosaic.version = 11 : i64} {
  func.func @flash_kernel(%arg0: i32, %arg1: i32, %arg2: i32, %arg3: memref<1x8x32xbf16, #tpu.memory_space<vmem>>, %arg4: memref<1x8x32xbf16, #tpu.memory_space<vmem>>, %arg5: memref<1x8x32xbf16, #tpu.memory_space<vmem>>, %arg6: memref<1x8x32xbf16, #tpu.memory_space<vmem>>, %arg7: memref<8x4xf32, #tpu.memory_space<vmem>>, %arg8: memref<8x32xf32, #tpu.memory_space<vmem>>, %arg9: memref<8x32xf32, #tpu.memory_space<vmem>>) attributes {dimension_semantics = [#tpu.dimension_semantics<parallel>, #tpu.dimension_semantics<parallel>, #tpu.dimension_semantics<arbitrary>], iteration_bounds = array<i64: 2, 1, 1>, scalar_prefetch = 0 : i64, scratch_operands = 3 : i64, tpu.core_type = #tpu.core_type<tc>, window_params = [{transform_indices = @transform_0, window_bounds = array<i64: 1, 8, 32>}, {transform_indices = @transform_1, window_bounds = array<i64: 1, 8, 32>}, {transform_indices = @transform_2, window_bounds = array<i64: 1, 8, 32>}, {transform_indices = @transform_3, window_bounds = array<i64: 1, 8, 32>}]} {
    %c0_i32 = arith.constant 0 : i32
    %0 = arith.cmpi eq, %arg2, %c0_i32 : i32
    %1 = arith.extui %0 : i1 to i32
    %c0_i32_0 = arith.constant 0 : i32
    %2 = arith.cmpi ne, %1, %c0_i32_0 : i32
    scf.if %2 {
      %cst = arith.constant -1.000000e+30 : f32
      %9 = vector.broadcast %cst : f32 to vector<8x4xf32>
      %c0 = arith.constant 0 : index
      %c0_4 = arith.constant 0 : index
      %10 = vector.load %arg7[%c0, %c0_4] : memref<8x4xf32, #tpu.memory_space<vmem>>, vector<8x4xf32>
      tpu.vector_store %arg7[%c0, %c0_4], %9 {strides = array<i32>} : memref<8x4xf32, #tpu.memory_space<vmem>>, vector<8x4xf32>,
      %cst_5 = arith.constant 0.000000e+00 : f32
      %11 = vector.broadcast %cst_5 : f32 to vector<8x32xf32>
      %c0_6 = arith.constant 0 : index
      %c0_7 = arith.constant 0 : index
      %12 = vector.load %arg8[%c0_6, %c0_7] : memref<8x32xf32, #tpu.memory_space<vmem>>, vector<8x32xf32>
      tpu.vector_store %arg8[%c0_6, %c0_7], %11 {strides = array<i32>} : memref<8x32xf32, #tpu.memory_space<vmem>>, vector<8x32xf32>,
      %cst_8 = arith.constant 0.000000e+00 : f32
      %13 = vector.broadcast %cst_8 : f32 to vector<8x32xf32>
      %c0_9 = arith.constant 0 : index
      %c0_10 = arith.constant 0 : index
      %14 = vector.load %arg9[%c0_9, %c0_10] : memref<8x32xf32, #tpu.memory_space<vmem>>, vector<8x32xf32>
      tpu.vector_store %arg9[%c0_9, %c0_10], %13 {strides = array<i32>} : memref<8x32xf32, #tpu.memory_space<vmem>>, vector<8x32xf32>,
    } else {
    }
    %3 = arith.cmpi sle, %arg2, %arg1 : i32
    %4 = arith.extui %3 : i1 to i32
    %c0_i32_1 = arith.constant 0 : i32
    %5 = arith.cmpi ne, %4, %c0_i32_1 : i32
    scf.if %5 {
      %c0 = arith.constant 0 : index
      %c0_4 = arith.constant 0 : index
      %c0_5 = arith.constant 0 : index
      %9 = vector.load %arg3[%c0, %c0_4, %c0_5] : memref<1x8x32xbf16, #tpu.memory_space<vmem>>, vector<1x8x32xbf16>
      %10 = vector.shape_cast %9 : vector<1x8x32xbf16> to vector<8x32xbf16>
      %c0_6 = arith.constant 0 : index
      %c0_7 = arith.constant 0 : index
      %c0_8 = arith.constant 0 : index
      %11 = vector.load %arg4[%c0_6, %c0_7, %c0_8] : memref<1x8x32xbf16, #tpu.memory_space<vmem>>, vector<1x8x32xbf16>
      %12 = vector.shape_cast %11 : vector<1x8x32xbf16> to vector<8x32xbf16>
      %c0_9 = arith.constant 0 : index
      %c0_10 = arith.constant 0 : index
      %c0_11 = arith.constant 0 : index
      %13 = vector.load %arg5[%c0_9, %c0_10, %c0_11] : memref<1x8x32xbf16, #tpu.memory_space<vmem>>, vector<1x8x32xbf16>
      %14 = vector.shape_cast %13 : vector<1x8x32xbf16> to vector<8x32xbf16>
      %c8_i32 = arith.constant 8 : i32
      %15 = arith.muli %arg1, %c8_i32 : i32
      %16 = tpu.iota {dimensions = array<i32: 0>} : vector<8x8xi32>
      %17 = vector.broadcast %15 : i32 to vector<8x8xi32>
      %18 = arith.addi %17, %16 : vector<8x8xi32>
      %c8_i32_12 = arith.constant 8 : i32
      %19 = arith.muli %arg2, %c8_i32_12 : i32
      %20 = tpu.iota {dimensions = array<i32: 1>} : vector<8x8xi32>
      %21 = vector.broadcast %19 : i32 to vector<8x8xi32>
      %22 = arith.addi %21, %20 : vector<8x8xi32>
      %23 = arith.cmpi sge, %18, %22 : vector<8x8xi32>
      %24 = vector.extract_strided_slice %10 {offsets = [0, 0], sizes = [8, 8], strides = [1, 1]} : vector<8x32xbf16> to vector<8x8xbf16>
      %25 = vector.extract_strided_slice %12 {offsets = [0, 0], sizes = [8, 8], strides = [1, 1]} : vector<8x32xbf16> to vector<8x8xbf16>
      %cst = arith.constant dense<0.000000e+00> : vector<8x8xf32>
      %26 = tpu.matmul %24, %25, %cst {dimension_numbers = #tpu.dot_dimension_numbers<[1], [1], [0], [0], [0, 0, 1, 0], [], []>} : vector<8x8xbf16>, vector<8x8xbf16>, vector<8x8xf32> -> vector<8x8xf32>
      %cst_13 = arith.constant 0.353553385 : f32
      %27 = vector.broadcast %cst_13 : f32 to vector<8x8xf32>
      %28 = arith.mulf %26, %27 : vector<8x8xf32>
      %cst_14 = arith.constant -1.000000e+30 : f32
      %29 = vector.broadcast %cst_14 : f32 to vector<8x8xf32>
      %30 = arith.select %23, %28, %29 : vector<8x8xi1>, vector<8x8xf32>
      %c0_15 = arith.constant 0 : index
      %c0_16 = arith.constant 0 : index
      %31 = vector.load %arg7[%c0_15, %c0_16] : memref<8x4xf32, #tpu.memory_space<vmem>>, vector<8x1xf32>
      %cst_17 = arith.constant dense<0xFF800000> : vector<8xf32>
      %32 = vector.multi_reduction <maximumf>, %30, %cst_17 [1] : vector<8x8xf32> to vector<8xf32>
      %33 = vector.shape_cast %32 : vector<8xf32> to vector<8x1xf32>
      %34 = arith.maximumf %31, %33 : vector<8x1xf32>
      %35 = arith.subf %31, %34 : vector<8x1xf32>
      %36 = math.exp %35 : vector<8x1xf32>
      %37 = vector.broadcast %34 : vector<8x1xf32> to vector<8x8xf32>
      %38 = arith.subf %30, %37 : vector<8x8xf32>
      %39 = math.exp %38 : vector<8x8xf32>
      %c0_18 = arith.constant 0 : index
      %c0_19 = arith.constant 0 : index
      %40 = vector.load %arg8[%c0_18, %c0_19] : memref<8x32xf32, #tpu.memory_space<vmem>>, vector<8x8xf32>
      %41 = vector.broadcast %36 : vector<8x1xf32> to vector<8x8xf32>
      %42 = arith.mulf %41, %40 : vector<8x8xf32>
      %cst_20 = arith.constant dense<0.000000e+00> : vector<8xf32>
      %43 = vector.multi_reduction <add>, %39, %cst_20 [1] : vector<8x8xf32> to vector<8xf32>
      %44 = vector.shape_cast %43 : vector<8xf32> to vector<8x1xf32>
      %45 = vector.broadcast %44 : vector<8x1xf32> to vector<8x8xf32>
      %46 = arith.addf %42, %45 : vector<8x8xf32>
      %c0_21 = arith.constant 0 : index
      %c0_22 = arith.constant 0 : index
      %47 = vector.load %arg8[%c0_21, %c0_22] : memref<8x32xf32, #tpu.memory_space<vmem>>, vector<8x8xf32>
      tpu.vector_store %arg8[%c0_21, %c0_22], %46 {strides = array<i32>} : memref<8x32xf32, #tpu.memory_space<vmem>>, vector<8x8xf32>,
      %c0_23 = arith.constant 0 : index
      %c0_24 = arith.constant 0 : index
      %48 = vector.load %arg9[%c0_23, %c0_24] : memref<8x32xf32, #tpu.memory_space<vmem>>, vector<8x8xf32>
      %49 = vector.broadcast %36 : vector<8x1xf32> to vector<8x8xf32>
      %50 = arith.mulf %49, %48 : vector<8x8xf32>
      %51 = arith.truncf %39 : vector<8x8xf32> to vector<8x8xbf16>
      %52 = vector.extract_strided_slice %14 {offsets = [0, 0], sizes = [8, 8], strides = [1, 1]} : vector<8x32xbf16> to vector<8x8xbf16>
      %cst_25 = arith.constant dense<0.000000e+00> : vector<8x8xf32>
      %53 = tpu.matmul %51, %52, %cst_25 {dimension_numbers = #tpu.dot_dimension_numbers<[1], [0], [0], [1], [0, 0, 1, 1], [], []>} : vector<8x8xbf16>, vector<8x8xbf16>, vector<8x8xf32> -> vector<8x8xf32>
      %54 = arith.addf %50, %53 : vector<8x8xf32>
      %c0_26 = arith.constant 0 : index
      %c0_27 = arith.constant 0 : index
      %55 = vector.load %arg9[%c0_26, %c0_27] : memref<8x32xf32, #tpu.memory_space<vmem>>, vector<8x8xf32>
      tpu.vector_store %arg9[%c0_26, %c0_27], %54 {strides = array<i32>} : memref<8x32xf32, #tpu.memory_space<vmem>>, vector<8x8xf32>,
      %c0_28 = arith.constant 0 : index
      %c0_29 = arith.constant 0 : index
      %56 = vector.load %arg7[%c0_28, %c0_29] : memref<8x4xf32, #tpu.memory_space<vmem>>, vector<8x1xf32>
      tpu.vector_store %arg7[%c0_28, %c0_29], %34 {strides = array<i32>} : memref<8x4xf32, #tpu.memory_space<vmem>>, vector<8x1xf32>,
      %57 = vector.extract_strided_slice %10 {offsets = [0, 8], sizes = [8, 8], strides = [1, 1]} : vector<8x32xbf16> to vector<8x8xbf16>
      %58 = vector.extract_strided_slice %12 {offsets = [0, 8], sizes = [8, 8], strides = [1, 1]} : vector<8x32xbf16> to vector<8x8xbf16>
      %cst_30 = arith.constant dense<0.000000e+00> : vector<8x8xf32>
      %59 = tpu.matmul %57, %58, %cst_30 {dimension_numbers = #tpu.dot_dimension_numbers<[1], [1], [0], [0], [0, 0, 1, 0], [], []>} : vector<8x8xbf16>, vector<8x8xbf16>, vector<8x8xf32> -> vector<8x8xf32>
      %cst_31 = arith.constant 0.353553385 : f32
      %60 = vector.broadcast %cst_31 : f32 to vector<8x8xf32>
      %61 = arith.mulf %59, %60 : vector<8x8xf32>
      %cst_32 = arith.constant -1.000000e+30 : f32
      %62 = vector.broadcast %cst_32 : f32 to vector<8x8xf32>
      %63 = arith.select %23, %61, %62 : vector<8x8xi1>, vector<8x8xf32>
      %c0_33 = arith.constant 0 : index
      %c1 = arith.constant 1 : index
      %64 = vector.load %arg7[%c0_33, %c1] : memref<8x4xf32, #tpu.memory_space<vmem>>, vector<8x1xf32>
      %cst_34 = arith.constant dense<0xFF800000> : vector<8xf32>
      %65 = vector.multi_reduction <maximumf>, %63, %cst_34 [1] : vector<8x8xf32> to vector<8xf32>
      %66 = vector.shape_cast %65 : vector<8xf32> to vector<8x1xf32>
      %67 = arith.maximumf %64, %66 : vector<8x1xf32>
      %68 = arith.subf %64, %67 : vector<8x1xf32>
      %69 = math.exp %68 : vector<8x1xf32>
      %70 = vector.broadcast %67 : vector<8x1xf32> to vector<8x8xf32>
      %71 = arith.subf %63, %70 : vector<8x8xf32>
      %72 = math.exp %71 : vector<8x8xf32>
      %c0_35 = arith.constant 0 : index
      %c8 = arith.constant 8 : index
      %73 = vector.load %arg8[%c0_35, %c8] : memref<8x32xf32, #tpu.memory_space<vmem>>, vector<8x8xf32>
      %74 = vector.broadcast %69 : vector<8x1xf32> to vector<8x8xf32>
      %75 = arith.mulf %74, %73 : vector<8x8xf32>
      %cst_36 = arith.constant dense<0.000000e+00> : vector<8xf32>
      %76 = vector.multi_reduction <add>, %72, %cst_36 [1] : vector<8x8xf32> to vector<8xf32>
      %77 = vector.shape_cast %76 : vector<8xf32> to vector<8x1xf32>
      %78 = vector.broadcast %77 : vector<8x1xf32> to vector<8x8xf32>
      %79 = arith.addf %75, %78 : vector<8x8xf32>
      %c0_37 = arith.constant 0 : index
      %c8_38 = arith.constant 8 : index
      %80 = vector.load %arg8[%c0_37, %c8_38] : memref<8x32xf32, #tpu.memory_space<vmem>>, vector<8x8xf32>
      tpu.vector_store %arg8[%c0_37, %c8_38], %79 {strides = array<i32>} : memref<8x32xf32, #tpu.memory_space<vmem>>, vector<8x8xf32>,
      %c0_39 = arith.constant 0 : index
      %c8_40 = arith.constant 8 : index
      %81 = vector.load %arg9[%c0_39, %c8_40] : memref<8x32xf32, #tpu.memory_space<vmem>>, vector<8x8xf32>
      %82 = vector.broadcast %69 : vector<8x1xf32> to vector<8x8xf32>
      %83 = arith.mulf %82, %81 : vector<8x8xf32>
      %84 = arith.truncf %72 : vector<8x8xf32> to vector<8x8xbf16>
      %85 = vector.extract_strided_slice %14 {offsets = [0, 8], sizes = [8, 8], strides = [1, 1]} : vector<8x32xbf16> to vector<8x8xbf16>
      %cst_41 = arith.constant dense<0.000000e+00> : vector<8x8xf32>
      %86 = tpu.matmul %84, %85, %cst_41 {dimension_numbers = #tpu.dot_dimension_numbers<[1], [0], [0], [1], [0, 0, 1, 1], [], []>} : vector<8x8xbf16>, vector<8x8xbf16>, vector<8x8xf32> -> vector<8x8xf32>
      %87 = arith.addf %83, %86 : vector<8x8xf32>
      %c0_42 = arith.constant 0 : index
      %c8_43 = arith.constant 8 : index
      %88 = vector.load %arg9[%c0_42, %c8_43] : memref<8x32xf32, #tpu.memory_space<vmem>>, vector<8x8xf32>
      tpu.vector_store %arg9[%c0_42, %c8_43], %87 {strides = array<i32>} : memref<8x32xf32, #tpu.memory_space<vmem>>, vector<8x8xf32>,
      %c0_44 = arith.constant 0 : index
      %c1_45 = arith.constant 1 : index
      %89 = vector.load %arg7[%c0_44, %c1_45] : memref<8x4xf32, #tpu.memory_space<vmem>>, vector<8x1xf32>
      tpu.vector_store %arg7[%c0_44, %c1_45], %67 {strides = array<i32>} : memref<8x4xf32, #tpu.memory_space<vmem>>, vector<8x1xf32>,
      %90 = vector.extract_strided_slice %10 {offsets = [0, 16], sizes = [8, 8], strides = [1, 1]} : vector<8x32xbf16> to vector<8x8xbf16>
      %91 = vector.extract_strided_slice %12 {offsets = [0, 16], sizes = [8, 8], strides = [1, 1]} : vector<8x32xbf16> to vector<8x8xbf16>
      %cst_46 = arith.constant dense<0.000000e+00> : vector<8x8xf32>
      %92 = tpu.matmul %90, %91, %cst_46 {dimension_numbers = #tpu.dot_dimension_numbers<[1], [1], [0], [0], [0, 0, 1, 0], [], []>} : vector<8x8xbf16>, vector<8x8xbf16>, vector<8x8xf32> -> vector<8x8xf32>
      %cst_47 = arith.constant 0.353553385 : f32
      %93 = vector.broadcast %cst_47 : f32 to vector<8x8xf32>
      %94 = arith.mulf %92, %93 : vector<8x8xf32>
      %cst_48 = arith.constant -1.000000e+30 : f32
      %95 = vector.broadcast %cst_48 : f32 to vector<8x8xf32>
      %96 = arith.select %23, %94, %95 : vector<8x8xi1>, vector<8x8xf32>
      %c0_49 = arith.constant 0 : index
      %c2 = arith.constant 2 : index
      %97 = vector.load %arg7[%c0_49, %c2] : memref<8x4xf32, #tpu.memory_space<vmem>>, vector<8x1xf32>
      %cst_50 = arith.constant dense<0xFF800000> : vector<8xf32>
      %98 = vector.multi_reduction <maximumf>, %96, %cst_50 [1] : vector<8x8xf32> to vector<8xf32>
      %99 = vector.shape_cast %98 : vector<8xf32> to vector<8x1xf32>
      %100 = arith.maximumf %97, %99 : vector<8x1xf32>
      %101 = arith.subf %97, %100 : vector<8x1xf32>
      %102 = math.exp %101 : vector<8x1xf32>
      %103 = vector.broadcast %100 : vector<8x1xf32> to vector<8x8xf32>
      %104 = arith.subf %96, %103 : vector<8x8xf32>
      %105 = math.exp %104 : vector<8x8xf32>
      %c0_51 = arith.constant 0 : index
      %c16 = arith.constant 16 : index
      %106 = vector.load %arg8[%c0_51, %c16] : memref<8x32xf32, #tpu.memory_space<vmem>>, vector<8x8xf32>
      %107 = vector.broadcast %102 : vector<8x1xf32> to vector<8x8xf32>
      %108 = arith.mulf %107, %106 : vector<8x8xf32>
      %cst_52 = arith.constant dense<0.000000e+00> : vector<8xf32>
      %109 = vector.multi_reduction <add>, %105, %cst_52 [1] : vector<8x8xf32> to vector<8xf32>
      %110 = vector.shape_cast %109 : vector<8xf32> to vector<8x1xf32>
      %111 = vector.broadcast %110 : vector<8x1xf32> to vector<8x8xf32>
      %112 = arith.addf %108, %111 : vector<8x8xf32>
      %c0_53 = arith.constant 0 : index
      %c16_54 = arith.constant 16 : index
      %113 = vector.load %arg8[%c0_53, %c16_54] : memref<8x32xf32, #tpu.memory_space<vmem>>, vector<8x8xf32>
      tpu.vector_store %arg8[%c0_53, %c16_54], %112 {strides = array<i32>} : memref<8x32xf32, #tpu.memory_space<vmem>>, vector<8x8xf32>,
      %c0_55 = arith.constant 0 : index
      %c16_56 = arith.constant 16 : index
      %114 = vector.load %arg9[%c0_55, %c16_56] : memref<8x32xf32, #tpu.memory_space<vmem>>, vector<8x8xf32>
      %115 = vector.broadcast %102 : vector<8x1xf32> to vector<8x8xf32>
      %116 = arith.mulf %115, %114 : vector<8x8xf32>
      %117 = arith.truncf %105 : vector<8x8xf32> to vector<8x8xbf16>
      %118 = vector.extract_strided_slice %14 {offsets = [0, 16], sizes = [8, 8], strides = [1, 1]} : vector<8x32xbf16> to vector<8x8xbf16>
      %cst_57 = arith.constant dense<0.000000e+00> : vector<8x8xf32>
      %119 = tpu.matmul %117, %118, %cst_57 {dimension_numbers = #tpu.dot_dimension_numbers<[1], [0], [0], [1], [0, 0, 1, 1], [], []>} : vector<8x8xbf16>, vector<8x8xbf16>, vector<8x8xf32> -> vector<8x8xf32>
      %120 = arith.addf %116, %119 : vector<8x8xf32>
      %c0_58 = arith.constant 0 : index
      %c16_59 = arith.constant 16 : index
      %121 = vector.load %arg9[%c0_58, %c16_59] : memref<8x32xf32, #tpu.memory_space<vmem>>, vector<8x8xf32>
      tpu.vector_store %arg9[%c0_58, %c16_59], %120 {strides = array<i32>} : memref<8x32xf32, #tpu.memory_space<vmem>>, vector<8x8xf32>,
      %c0_60 = arith.constant 0 : index
      %c2_61 = arith.constant 2 : index
      %122 = vector.load %arg7[%c0_60, %c2_61] : memref<8x4xf32, #tpu.memory_space<vmem>>, vector<8x1xf32>
      tpu.vector_store %arg7[%c0_60, %c2_61], %100 {strides = array<i32>} : memref<8x4xf32, #tpu.memory_space<vmem>>, vector<8x1xf32>,
      %123 = vector.extract_strided_slice %10 {offsets = [0, 24], sizes = [8, 8], strides = [1, 1]} : vector<8x32xbf16> to vector<8x8xbf16>
      %124 = vector.extract_strided_slice %12 {offsets = [0, 24], sizes = [8, 8], strides = [1, 1]} : vector<8x32xbf16> to vector<8x8xbf16>
      %cst_62 = arith.constant dense<0.000000e+00> : vector<8x8xf32>
      %125 = tpu.matmul %123, %124, %cst_62 {dimension_numbers = #tpu.dot_dimension_numbers<[1], [1], [0], [0], [0, 0, 1, 0], [], []>} : vector<8x8xbf16>, vector<8x8xbf16>, vector<8x8xf32> -> vector<8x8xf32>
      %cst_63 = arith.constant 0.353553385 : f32
      %126 = vector.broadcast %cst_63 : f32 to vector<8x8xf32>
      %127 = arith.mulf %125, %126 : vector<8x8xf32>
      %cst_64 = arith.constant -1.000000e+30 : f32
      %128 = vector.broadcast %cst_64 : f32 to vector<8x8xf32>
      %129 = arith.select %23, %127, %128 : vector<8x8xi1>, vector<8x8xf32>
      %c0_65 = arith.constant 0 : index
      %c3 = arith.constant 3 : index
      %130 = vector.load %arg7[%c0_65, %c3] : memref<8x4xf32, #tpu.memory_space<vmem>>, vector<8x1xf32>
      %cst_66 = arith.constant dense<0xFF800000> : vector<8xf32>
      %131 = vector.multi_reduction <maximumf>, %129, %cst_66 [1] : vector<8x8xf32> to vector<8xf32>
      %132 = vector.shape_cast %131 : vector<8xf32> to vector<8x1xf32>
      %133 = arith.maximumf %130, %132 : vector<8x1xf32>
      %134 = arith.subf %130, %133 : vector<8x1xf32>
      %135 = math.exp %134 : vector<8x1xf32>
      %136 = vector.broadcast %133 : vector<8x1xf32> to vector<8x8xf32>
      %137 = arith.subf %129, %136 : vector<8x8xf32>
      %138 = math.exp %137 : vector<8x8xf32>
      %c0_67 = arith.constant 0 : index
      %c24 = arith.constant 24 : index
      %139 = vector.load %arg8[%c0_67, %c24] : memref<8x32xf32, #tpu.memory_space<vmem>>, vector<8x8xf32>
      %140 = vector.broadcast %135 : vector<8x1xf32> to vector<8x8xf32>
      %141 = arith.mulf %140, %139 : vector<8x8xf32>
      %cst_68 = arith.constant dense<0.000000e+00> : vector<8xf32>
      %142 = vector.multi_reduction <add>, %138, %cst_68 [1] : vector<8x8xf32> to vector<8xf32>
      %143 = vector.shape_cast %142 : vector<8xf32> to vector<8x1xf32>
      %144 = vector.broadcast %143 : vector<8x1xf32> to vector<8x8xf32>
      %145 = arith.addf %141, %144 : vector<8x8xf32>
      %c0_69 = arith.constant 0 : index
      %c24_70 = arith.constant 24 : index
      %146 = vector.load %arg8[%c0_69, %c24_70] : memref<8x32xf32, #tpu.memory_space<vmem>>, vector<8x8xf32>
      tpu.vector_store %arg8[%c0_69, %c24_70], %145 {strides = array<i32>} : memref<8x32xf32, #tpu.memory_space<vmem>>, vector<8x8xf32>,
      %c0_71 = arith.constant 0 : index
      %c24_72 = arith.constant 24 : index
      %147 = vector.load %arg9[%c0_71, %c24_72] : memref<8x32xf32, #tpu.memory_space<vmem>>, vector<8x8xf32>
      %148 = vector.broadcast %135 : vector<8x1xf32> to vector<8x8xf32>
      %149 = arith.mulf %148, %147 : vector<8x8xf32>
      %150 = arith.truncf %138 : vector<8x8xf32> to vector<8x8xbf16>
      %151 = vector.extract_strided_slice %14 {offsets = [0, 24], sizes = [8, 8], strides = [1, 1]} : vector<8x32xbf16> to vector<8x8xbf16>
      %cst_73 = arith.constant dense<0.000000e+00> : vector<8x8xf32>
      %152 = tpu.matmul %150, %151, %cst_73 {dimension_numbers = #tpu.dot_dimension_numbers<[1], [0], [0], [1], [0, 0, 1, 1], [], []>} : vector<8x8xbf16>, vector<8x8xbf16>, vector<8x8xf32> -> vector<8x8xf32>
      %153 = arith.addf %149, %152 : vector<8x8xf32>
      %c0_74 = arith.constant 0 : index
      %c24_75 = arith.constant 24 : index
      %154 = vector.load %arg9[%c0_74, %c24_75] : memref<8x32xf32, #tpu.memory_space<vmem>>, vector<8x8xf32>
      tpu.vector_store %arg9[%c0_74, %c24_75], %153 {strides = array<i32>} : memref<8x32xf32, #tpu.memory_space<vmem>>, vector<8x8xf32>,
      %c0_76 = arith.constant 0 : index
      %c3_77 = arith.constant 3 : index
      %155 = vector.load %arg7[%c0_76, %c3_77] : memref<8x4xf32, #tpu.memory_space<vmem>>, vector<8x1xf32>
      tpu.vector_store %arg7[%c0_76, %c3_77], %133 {strides = array<i32>} : memref<8x4xf32, #tpu.memory_space<vmem>>, vector<8x1xf32>,
    } else {
    }
    %c0_i32_2 = arith.constant 0 : i32
    %6 = arith.cmpi eq, %arg2, %c0_i32_2 : i32
    %7 = arith.extui %6 : i1 to i32
    %c0_i32_3 = arith.constant 0 : i32
    %8 = arith.cmpi ne, %7, %c0_i32_3 : i32
    scf.if %8 {
      %c0 = arith.constant 0 : index
      %c0_4 = arith.constant 0 : index
      %9 = vector.load %arg9[%c0, %c0_4] : memref<8x32xf32, #tpu.memory_space<vmem>>, vector<8x32xf32>
      %c0_5 = arith.constant 0 : index
      %c0_6 = arith.constant 0 : index
      %10 = vector.load %arg8[%c0_5, %c0_6] : memref<8x32xf32, #tpu.memory_space<vmem>>, vector<8x32xf32>
      %11 = tpu.reciprocal %10 {approx = true} : vector<8x32xf32> -> vector<8x32xf32>
      %12 = arith.mulf %9, %11 : vector<8x32xf32>
      %13 = arith.truncf %12 : vector<8x32xf32> to vector<8x32xbf16>
      %c0_7 = arith.constant 0 : index
      %c0_8 = arith.constant 0 : index
      %c0_9 = arith.constant 0 : index
      %14 = vector.load %arg6[%c0_7, %c0_8, %c0_9] : memref<1x8x32xbf16, #tpu.memory_space<vmem>>, vector<1x8x32xbf16>
      %15 = vector.shape_cast %14 : vector<1x8x32xbf16> to vector<8x32xbf16>
      %16 = vector.shape_cast %13 : vector<8x32xbf16> to vector<1x8x32xbf16>
      tpu.vector_store %arg6[%c0_7, %c0_8, %c0_9], %16 {strides = array<i32>} : memref<1x8x32xbf16, #tpu.memory_space<vmem>>, vector<1x8x32xbf16>,
    } else {
    }
    return
  }
  func.func @transform_0(%arg0: i32, %arg1: i32, %arg2: i32) -> (i32, i32, i32) {
    %c0_i32 = arith.constant 0 : i32
    %c0_i32_0 = arith.constant 0 : i32
    return %arg0, %arg1, %c0_i32 : i32, i32, i32
  }
  func.func @transform_1(%arg0: i32, %arg1: i32, %arg2: i32) -> (i32, i32, i32) {
    %0 = arith.minsi %arg1, %arg2 : i32
    %c0_i32 = arith.constant 0 : i32
    %c0_i32_0 = arith.constant 0 : i32
    return %arg0, %0, %c0_i32 : i32, i32, i32
  }
  func.func @transform_2(%arg0: i32, %arg1: i32, %arg2: i32) -> (i32, i32, i32) {
    %0 = arith.minsi %arg1, %arg2 : i32
    %c0_i32 = arith.constant 0 : i32
    %c0_i32_0 = arith.constant 0 : i32
    return %arg0, %0, %c0_i32 : i32, i32, i32
  }
  func.func @transform_3(%arg0: i32, %arg1: i32, %arg2: i32) -> (i32, i32, i32) {
    %c0_i32 = arith.constant 0 : i32
    %c0_i32_0 = arith.constant 0 : i32
    return %arg0, %arg1, %c0_i32 : i32, i32, i32
  }
}

module attributes {stable_mosaic.version = 11 : i64} {
  func.func @post_block_kernel(%arg0: i32, %arg1: i32, %arg2: i32, %arg3: memref<1x8x32xf32, #tpu.memory_space<vmem>>, %arg4: memref<1x8x32xbf16, #tpu.memory_space<vmem>>, %arg5: memref<32x32xbf16, #tpu.memory_space<vmem>>, %arg6: memref<1x32xf32, #tpu.memory_space<vmem>>, %arg7: memref<1x32xf32, #tpu.memory_space<vmem>>, %arg8: memref<1x32xf32, #tpu.memory_space<vmem>>, %arg9: memref<32x128xbf16, #tpu.memory_space<vmem>>, %arg10: memref<1x128xf32, #tpu.memory_space<vmem>>, %arg11: memref<128x32xbf16, #tpu.memory_space<vmem>>, %arg12: memref<1x32xf32, #tpu.memory_space<vmem>>, %arg13: memref<1x8x32xf32, #tpu.memory_space<vmem>>, %arg14: memref<8x32xf32, #tpu.memory_space<vmem>>, %arg15: memref<8x32xbf16, #tpu.memory_space<vmem>>, %arg16: memref<8x32xf32, #tpu.memory_space<vmem>>) attributes {dimension_semantics = [#tpu.dimension_semantics<parallel>, #tpu.dimension_semantics<parallel>, #tpu.dimension_semantics<arbitrary>], iteration_bounds = array<i64: 2, 1, 1>, scalar_prefetch = 0 : i64, scratch_operands = 3 : i64, tpu.core_type = #tpu.core_type<tc>, window_params = [{transform_indices = @transform_0, window_bounds = array<i64: 1, 8, 32>}, {transform_indices = @transform_1, window_bounds = array<i64: 1, 8, 32>}, {pipeline_mode = #tpu.pipeline_mode<synchronous>, transform_indices = @transform_2, window_bounds = array<i64: 32, 32>}, {pipeline_mode = #tpu.pipeline_mode<synchronous>, transform_indices = @transform_3, window_bounds = array<i64: 1, 32>}, {pipeline_mode = #tpu.pipeline_mode<synchronous>, transform_indices = @transform_4, window_bounds = array<i64: 1, 32>}, {pipeline_mode = #tpu.pipeline_mode<synchronous>, transform_indices = @transform_5, window_bounds = array<i64: 1, 32>}, {transform_indices = @transform_6, window_bounds = array<i64: 32, 128>}, {transform_indices = @transform_7, window_bounds = array<i64: 1, 128>}, {transform_indices = @transform_8, window_bounds = array<i64: 128, 32>}, {pipeline_mode = #tpu.pipeline_mode<synchronous>, transform_indices = @transform_9, window_bounds = array<i64: 1, 32>}, {transform_indices = @transform_10, window_bounds = array<i64: 1, 8, 32>}]} {
    %c0_i32 = arith.constant 0 : i32
    %0 = arith.cmpi eq, %arg2, %c0_i32 : i32
    %1 = arith.extui %0 : i1 to i32
    %c0_i32_0 = arith.constant 0 : i32
    %2 = arith.cmpi ne, %1, %c0_i32_0 : i32
    scf.if %2 {
      %c0_31 = arith.constant 0 : index
      %c0_32 = arith.constant 0 : index
      %c0_33 = arith.constant 0 : index
      %59 = vector.load %arg3[%c0_31, %c0_32, %c0_33] : memref<1x8x32xf32, #tpu.memory_space<vmem>>, vector<1x8x32xf32>
      %60 = vector.shape_cast %59 : vector<1x8x32xf32> to vector<8x32xf32>
      %c0_34 = arith.constant 0 : index
      %c0_35 = arith.constant 0 : index
      %c0_36 = arith.constant 0 : index
      %61 = vector.load %arg4[%c0_34, %c0_35, %c0_36] : memref<1x8x32xbf16, #tpu.memory_space<vmem>>, vector<1x8x32xbf16>
      %62 = vector.shape_cast %61 : vector<1x8x32xbf16> to vector<8x32xbf16>
      %c0_37 = arith.constant 0 : index
      %c0_38 = arith.constant 0 : index
      %63 = vector.load %arg5[%c0_37, %c0_38] : memref<32x32xbf16, #tpu.memory_space<vmem>>, vector<32x32xbf16>
      %cst_39 = arith.constant dense<0.000000e+00> : vector<8x32xf32>
      %64 = tpu.matmul %62, %63, %cst_39 {dimension_numbers = #tpu.dot_dimension_numbers<[1], [0], [0], [1], [0, 0, 1, 1], [], []>} : vector<8x32xbf16>, vector<32x32xbf16>, vector<8x32xf32> -> vector<8x32xf32>
      %65 = arith.addf %60, %64 : vector<8x32xf32>
      %c0_40 = arith.constant 0 : index
      %c0_41 = arith.constant 0 : index
      %66 = vector.load %arg6[%c0_40, %c0_41] : memref<1x32xf32, #tpu.memory_space<vmem>>, vector<1x32xf32>
      %67 = vector.broadcast %66 : vector<1x32xf32> to vector<8x32xf32>
      %68 = arith.addf %65, %67 : vector<8x32xf32>
      %c0_42 = arith.constant 0 : index
      %c0_43 = arith.constant 0 : index
      %69 = vector.load %arg14[%c0_42, %c0_43] : memref<8x32xf32, #tpu.memory_space<vmem>>, vector<8x32xf32>
      tpu.vector_store %arg14[%c0_42, %c0_43], %68 {strides = array<i32>} : memref<8x32xf32, #tpu.memory_space<vmem>>, vector<8x32xf32>,
      %c0_44 = arith.constant 0 : index
      %c0_45 = arith.constant 0 : index
      %70 = vector.load %arg7[%c0_44, %c0_45] : memref<1x32xf32, #tpu.memory_space<vmem>>, vector<1x32xf32>
      %c0_46 = arith.constant 0 : index
      %c0_47 = arith.constant 0 : index
      %71 = vector.load %arg8[%c0_46, %c0_47] : memref<1x32xf32, #tpu.memory_space<vmem>>, vector<1x32xf32>
      %cst_48 = arith.constant dense<0.000000e+00> : vector<8xf32>
      %72 = vector.multi_reduction <add>, %68, %cst_48 [1] : vector<8x32xf32> to vector<8xf32>
      %73 = vector.shape_cast %72 : vector<8xf32> to vector<8x1xf32>
      %cst_49 = arith.constant 3.200000e+01 : f32
      %74 = vector.broadcast %cst_49 : f32 to vector<8x1xf32>
      %75 = arith.divf %73, %74 : vector<8x1xf32>
      %76 = vector.broadcast %75 : vector<8x1xf32> to vector<8x32xf32>
      %77 = arith.subf %68, %76 : vector<8x32xf32>
      %78 = arith.mulf %77, %77 : vector<8x32xf32>
      %cst_50 = arith.constant dense<0.000000e+00> : vector<8xf32>
      %79 = vector.multi_reduction <add>, %78, %cst_50 [1] : vector<8x32xf32> to vector<8xf32>
      %80 = vector.shape_cast %79 : vector<8xf32> to vector<8x1xf32>
      %cst_51 = arith.constant 3.200000e+01 : f32
      %81 = vector.broadcast %cst_51 : f32 to vector<8x1xf32>
      %82 = arith.divf %80, %81 : vector<8x1xf32>
      %83 = vector.broadcast %75 : vector<8x1xf32> to vector<8x32xf32>
      %84 = arith.subf %68, %83 : vector<8x32xf32>
      %cst_52 = arith.constant 9.99999974E-6 : f32
      %85 = vector.broadcast %cst_52 : f32 to vector<8x1xf32>
      %86 = arith.addf %82, %85 : vector<8x1xf32>
      %87 = math.rsqrt %86 : vector<8x1xf32>
      %88 = vector.broadcast %87 : vector<8x1xf32> to vector<8x32xf32>
      %89 = arith.mulf %84, %88 : vector<8x32xf32>
      %90 = vector.broadcast %70 : vector<1x32xf32> to vector<8x32xf32>
      %91 = arith.mulf %89, %90 : vector<8x32xf32>
      %92 = vector.broadcast %71 : vector<1x32xf32> to vector<8x32xf32>
      %93 = arith.addf %91, %92 : vector<8x32xf32>
      %94 = arith.truncf %93 : vector<8x32xf32> to vector<8x32xbf16>
      %c0_53 = arith.constant 0 : index
      %c0_54 = arith.constant 0 : index
      %95 = vector.load %arg15[%c0_53, %c0_54] : memref<8x32xbf16, #tpu.memory_space<vmem>>, vector<8x32xbf16>
      tpu.vector_store %arg15[%c0_53, %c0_54], %94 {strides = array<i32>} : memref<8x32xbf16, #tpu.memory_space<vmem>>, vector<8x32xbf16>,
      %cst_55 = arith.constant 0.000000e+00 : f32
      %96 = vector.broadcast %cst_55 : f32 to vector<8x32xf32>
      %c0_56 = arith.constant 0 : index
      %c0_57 = arith.constant 0 : index
      %97 = vector.load %arg16[%c0_56, %c0_57] : memref<8x32xf32, #tpu.memory_space<vmem>>, vector<8x32xf32>
      tpu.vector_store %arg16[%c0_56, %c0_57], %96 {strides = array<i32>} : memref<8x32xf32, #tpu.memory_space<vmem>>, vector<8x32xf32>,
    } else {
    }
    %c0 = arith.constant 0 : index
    %c0_1 = arith.constant 0 : index
    %3 = vector.load %arg15[%c0, %c0_1] : memref<8x32xbf16, #tpu.memory_space<vmem>>, vector<8x32xbf16>
    %c0_2 = arith.constant 0 : index
    %c0_3 = arith.constant 0 : index
    %4 = vector.load %arg9[%c0_2, %c0_3] : memref<32x128xbf16, #tpu.memory_space<vmem>>, vector<32x128xbf16>
    %cst = arith.constant dense<0.000000e+00> : vector<8x128xf32>
    %5 = tpu.matmul %3, %4, %cst {dimension_numbers = #tpu.dot_dimension_numbers<[1], [0], [0], [1], [0, 0, 1, 1], [], []>} : vector<8x32xbf16>, vector<32x128xbf16>, vector<8x128xf32> -> vector<8x128xf32>
    %c0_4 = arith.constant 0 : index
    %c0_5 = arith.constant 0 : index
    %6 = vector.load %arg10[%c0_4, %c0_5] : memref<1x128xf32, #tpu.memory_space<vmem>>, vector<1x128xf32>
    %7 = vector.broadcast %6 : vector<1x128xf32> to vector<8x128xf32>
    %8 = arith.addf %5, %7 : vector<8x128xf32>
    %c0_6 = arith.constant 0 : index
    %c0_7 = arith.constant 0 : index
    %9 = vector.load %arg16[%c0_6, %c0_7] : memref<8x32xf32, #tpu.memory_space<vmem>>, vector<8x32xf32>
    %cst_8 = arith.constant 5.000000e-01 : f32
    %10 = vector.broadcast %cst_8 : f32 to vector<8x128xf32>
    %11 = arith.mulf %10, %8 : vector<8x128xf32>
    %cst_9 = arith.constant 0.707106769 : f32
    %12 = vector.broadcast %cst_9 : f32 to vector<8x128xf32>
    %13 = arith.mulf %8, %12 : vector<8x128xf32>
    %cst_10 = arith.constant 0.000000e+00 : f32
    %14 = vector.broadcast %cst_10 : f32 to vector<8x128xf32>
    %15 = arith.cmpf oge, %13, %14 : vector<8x128xf32>
    %cst_11 = arith.constant 1.000000e+00 : f32
    %cst_12 = arith.constant -1.000000e+00 : f32
    %16 = vector.broadcast %cst_11 : f32 to vector<8x128xf32>
    %17 = vector.broadcast %cst_12 : f32 to vector<8x128xf32>
    %18 = arith.select %15, %16, %17 : vector<8x128xi1>, vector<8x128xf32>
    %19 = math.absf %13 : vector<8x128xf32>
    %cst_13 = arith.constant 0.327591091 : f32
    %20 = vector.broadcast %cst_13 : f32 to vector<8x128xf32>
    %21 = arith.mulf %20, %19 : vector<8x128xf32>
    %cst_14 = arith.constant 1.000000e+00 : f32
    %22 = vector.broadcast %cst_14 : f32 to vector<8x128xf32>
    %23 = arith.addf %22, %21 : vector<8x128xf32>
    %cst_15 = arith.constant 1.000000e+00 : f32
    %24 = vector.broadcast %cst_15 : f32 to vector<8x128xf32>
    %25 = arith.divf %24, %23 : vector<8x128xf32>
    %cst_16 = arith.constant 1.06140542 : f32
    %26 = vector.broadcast %cst_16 : f32 to vector<8x128xf32>
    %27 = arith.mulf %26, %25 : vector<8x128xf32>
    %cst_17 = arith.constant -1.45315206 : f32
    %28 = vector.broadcast %cst_17 : f32 to vector<8x128xf32>
    %29 = arith.addf %27, %28 : vector<8x128xf32>
    %30 = arith.mulf %29, %25 : vector<8x128xf32>
    %cst_18 = arith.constant 1.42141378 : f32
    %31 = vector.broadcast %cst_18 : f32 to vector<8x128xf32>
    %32 = arith.addf %30, %31 : vector<8x128xf32>
    %33 = arith.mulf %32, %25 : vector<8x128xf32>
    %cst_19 = arith.constant -0.284496725 : f32
    %34 = vector.broadcast %cst_19 : f32 to vector<8x128xf32>
    %35 = arith.addf %33, %34 : vector<8x128xf32>
    %36 = arith.mulf %35, %25 : vector<8x128xf32>
    %cst_20 = arith.constant 0.254829586 : f32
    %37 = vector.broadcast %cst_20 : f32 to vector<8x128xf32>
    %38 = arith.addf %36, %37 : vector<8x128xf32>
    %39 = arith.mulf %38, %25 : vector<8x128xf32>
    %cst_21 = arith.constant 0.000000e+00 : f32
    %40 = vector.broadcast %cst_21 : f32 to vector<8x128xf32>
    %41 = arith.subf %40, %19 : vector<8x128xf32>
    %42 = arith.mulf %41, %19 : vector<8x128xf32>
    %43 = math.exp %42 : vector<8x128xf32>
    %44 = arith.mulf %39, %43 : vector<8x128xf32>
    %cst_22 = arith.constant 1.000000e+00 : f32
    %45 = vector.broadcast %cst_22 : f32 to vector<8x128xf32>
    %46 = arith.subf %45, %44 : vector<8x128xf32>
    %47 = arith.mulf %18, %46 : vector<8x128xf32>
    %cst_23 = arith.constant 1.000000e+00 : f32
    %48 = vector.broadcast %cst_23 : f32 to vector<8x128xf32>
    %49 = arith.addf %48, %47 : vector<8x128xf32>
    %50 = arith.mulf %11, %49 : vector<8x128xf32>
    %51 = arith.truncf %50 : vector<8x128xf32> to vector<8x128xbf16>
    %c0_24 = arith.constant 0 : index
    %c0_25 = arith.constant 0 : index
    %52 = vector.load %arg11[%c0_24, %c0_25] : memref<128x32xbf16, #tpu.memory_space<vmem>>, vector<128x32xbf16>
    %cst_26 = arith.constant dense<0.000000e+00> : vector<8x32xf32>
    %53 = tpu.matmul %51, %52, %cst_26 {dimension_numbers = #tpu.dot_dimension_numbers<[1], [0], [0], [1], [0, 0, 1, 1], [], []>} : vector<8x128xbf16>, vector<128x32xbf16>, vector<8x32xf32> -> vector<8x32xf32>
    %54 = arith.addf %9, %53 : vector<8x32xf32>
    %c0_27 = arith.constant 0 : index
    %c0_28 = arith.constant 0 : index
    %55 = vector.load %arg16[%c0_27, %c0_28] : memref<8x32xf32, #tpu.memory_space<vmem>>, vector<8x32xf32>
    tpu.vector_store %arg16[%c0_27, %c0_28], %54 {strides = array<i32>} : memref<8x32xf32, #tpu.memory_space<vmem>>, vector<8x32xf32>,
    %c0_i32_29 = arith.constant 0 : i32
    %56 = arith.cmpi eq, %arg2, %c0_i32_29 : i32
    %57 = arith.extui %56 : i1 to i32
    %c0_i32_30 = arith.constant 0 : i32
    %58 = arith.cmpi ne, %57, %c0_i32_30 : i32
    scf.if %58 {
      %c0_31 = arith.constant 0 : index
      %c0_32 = arith.constant 0 : index
      %59 = vector.load %arg14[%c0_31, %c0_32] : memref<8x32xf32, #tpu.memory_space<vmem>>, vector<8x32xf32>
      %c0_33 = arith.constant 0 : index
      %c0_34 = arith.constant 0 : index
      %60 = vector.load %arg16[%c0_33, %c0_34] : memref<8x32xf32, #tpu.memory_space<vmem>>, vector<8x32xf32>
      %61 = arith.addf %59, %60 : vector<8x32xf32>
      %c0_35 = arith.constant 0 : index
      %c0_36 = arith.constant 0 : index
      %62 = vector.load %arg12[%c0_35, %c0_36] : memref<1x32xf32, #tpu.memory_space<vmem>>, vector<1x32xf32>
      %63 = vector.broadcast %62 : vector<1x32xf32> to vector<8x32xf32>
      %64 = arith.addf %61, %63 : vector<8x32xf32>
      %c0_37 = arith.constant 0 : index
      %c0_38 = arith.constant 0 : index
      %c0_39 = arith.constant 0 : index
      %65 = vector.load %arg13[%c0_37, %c0_38, %c0_39] : memref<1x8x32xf32, #tpu.memory_space<vmem>>, vector<1x8x32xf32>
      %66 = vector.shape_cast %65 : vector<1x8x32xf32> to vector<8x32xf32>
      %67 = vector.shape_cast %64 : vector<8x32xf32> to vector<1x8x32xf32>
      tpu.vector_store %arg13[%c0_37, %c0_38, %c0_39], %67 {strides = array<i32>} : memref<1x8x32xf32, #tpu.memory_space<vmem>>, vector<1x8x32xf32>,
    } else {
    }
    return
  }
  func.func @transform_0(%arg0: i32, %arg1: i32, %arg2: i32) -> (i32, i32, i32) {
    %c0_i32 = arith.constant 0 : i32
    %c0_i32_0 = arith.constant 0 : i32
    return %arg0, %arg1, %c0_i32 : i32, i32, i32
  }
  func.func @transform_1(%arg0: i32, %arg1: i32, %arg2: i32) -> (i32, i32, i32) {
    %c0_i32 = arith.constant 0 : i32
    %c0_i32_0 = arith.constant 0 : i32
    return %arg0, %arg1, %c0_i32 : i32, i32, i32
  }
  func.func @transform_2(%arg0: i32, %arg1: i32, %arg2: i32) -> (i32, i32) {
    %c0_i32 = arith.constant 0 : i32
    %c0_i32_0 = arith.constant 0 : i32
    %c0_i32_1 = arith.constant 0 : i32
    return %c0_i32, %c0_i32_0 : i32, i32
  }
  func.func @transform_3(%arg0: i32, %arg1: i32, %arg2: i32) -> (i32, i32) {
    %c0_i32 = arith.constant 0 : i32
    %c0_i32_0 = arith.constant 0 : i32
    %c0_i32_1 = arith.constant 0 : i32
    return %c0_i32, %c0_i32_0 : i32, i32
  }
  func.func @transform_4(%arg0: i32, %arg1: i32, %arg2: i32) -> (i32, i32) {
    %c0_i32 = arith.constant 0 : i32
    %c0_i32_0 = arith.constant 0 : i32
    %c0_i32_1 = arith.constant 0 : i32
    return %c0_i32, %c0_i32_0 : i32, i32
  }
  func.func @transform_5(%arg0: i32, %arg1: i32, %arg2: i32) -> (i32, i32) {
    %c0_i32 = arith.constant 0 : i32
    %c0_i32_0 = arith.constant 0 : i32
    %c0_i32_1 = arith.constant 0 : i32
    return %c0_i32, %c0_i32_0 : i32, i32
  }
  func.func @transform_6(%arg0: i32, %arg1: i32, %arg2: i32) -> (i32, i32) {
    %c0_i32 = arith.constant 0 : i32
    %c0_i32_0 = arith.constant 0 : i32
    return %c0_i32, %arg2 : i32, i32
  }
  func.func @transform_7(%arg0: i32, %arg1: i32, %arg2: i32) -> (i32, i32) {
    %c0_i32 = arith.constant 0 : i32
    %c0_i32_0 = arith.constant 0 : i32
    return %c0_i32, %arg2 : i32, i32
  }
  func.func @transform_8(%arg0: i32, %arg1: i32, %arg2: i32) -> (i32, i32) {
    %c0_i32 = arith.constant 0 : i32
    %c0_i32_0 = arith.constant 0 : i32
    return %arg2, %c0_i32 : i32, i32
  }
  func.func @transform_9(%arg0: i32, %arg1: i32, %arg2: i32) -> (i32, i32) {
    %c0_i32 = arith.constant 0 : i32
    %c0_i32_0 = arith.constant 0 : i32
    %c0_i32_1 = arith.constant 0 : i32
    return %c0_i32, %c0_i32_0 : i32, i32
  }
  func.func @transform_10(%arg0: i32, %arg1: i32, %arg2: i32) -> (i32, i32, i32) {
    %c0_i32 = arith.constant 0 : i32
    %c0_i32_0 = arith.constant 0 : i32
    return %arg0, %arg1, %c0_i32 : i32, i32, i32
  }
}

module attributes {stable_mosaic.version = 11 : i64} {
  func.func @qkv_kernel(%arg0: i32, %arg1: i32, %arg2: memref<1x8x32xf32, #tpu.memory_space<vmem>>, %arg3: memref<1x8x32xbf16, #tpu.memory_space<vmem>>, %arg4: memref<1x32xf32, #tpu.memory_space<vmem>>, %arg5: memref<1x32xf32, #tpu.memory_space<vmem>>, %arg6: memref<32x96xbf16, #tpu.memory_space<vmem>>, %arg7: memref<1x96xf32, #tpu.memory_space<vmem>>, %arg8: memref<1x8x32xbf16, #tpu.memory_space<vmem>>, %arg9: memref<1x8x32xbf16, #tpu.memory_space<vmem>>, %arg10: memref<1x8x32xbf16, #tpu.memory_space<vmem>>) attributes {dimension_semantics = [#tpu.dimension_semantics<parallel>, #tpu.dimension_semantics<parallel>], iteration_bounds = array<i64: 2, 1>, scalar_prefetch = 0 : i64, scratch_operands = 0 : i64, tpu.core_type = #tpu.core_type<tc>, window_params = [{transform_indices = @transform_0, window_bounds = array<i64: 1, 8, 32>}, {transform_indices = @transform_1, window_bounds = array<i64: 1, 8, 32>}, {pipeline_mode = #tpu.pipeline_mode<synchronous>, transform_indices = @transform_2, window_bounds = array<i64: 1, 32>}, {pipeline_mode = #tpu.pipeline_mode<synchronous>, transform_indices = @transform_3, window_bounds = array<i64: 1, 32>}, {pipeline_mode = #tpu.pipeline_mode<synchronous>, transform_indices = @transform_4, window_bounds = array<i64: 32, 96>}, {pipeline_mode = #tpu.pipeline_mode<synchronous>, transform_indices = @transform_5, window_bounds = array<i64: 1, 96>}, {transform_indices = @transform_6, window_bounds = array<i64: 1, 8, 32>}, {transform_indices = @transform_7, window_bounds = array<i64: 1, 8, 32>}, {transform_indices = @transform_8, window_bounds = array<i64: 1, 8, 32>}]} {
    %c0 = arith.constant 0 : index
    %c0_0 = arith.constant 0 : index
    %c0_1 = arith.constant 0 : index
    %0 = vector.load %arg2[%c0, %c0_0, %c0_1] : memref<1x8x32xf32, #tpu.memory_space<vmem>>, vector<1x8x32xf32>
    %1 = vector.shape_cast %0 : vector<1x8x32xf32> to vector<8x32xf32>
    %c0_2 = arith.constant 0 : index
    %c0_3 = arith.constant 0 : index
    %2 = vector.load %arg4[%c0_2, %c0_3] : memref<1x32xf32, #tpu.memory_space<vmem>>, vector<1x32xf32>
    %c0_4 = arith.constant 0 : index
    %c0_5 = arith.constant 0 : index
    %3 = vector.load %arg5[%c0_4, %c0_5] : memref<1x32xf32, #tpu.memory_space<vmem>>, vector<1x32xf32>
    %cst = arith.constant dense<0.000000e+00> : vector<8xf32>
    %4 = vector.multi_reduction <add>, %1, %cst [1] : vector<8x32xf32> to vector<8xf32>
    %5 = vector.shape_cast %4 : vector<8xf32> to vector<8x1xf32>
    %cst_6 = arith.constant 3.200000e+01 : f32
    %6 = vector.broadcast %cst_6 : f32 to vector<8x1xf32>
    %7 = arith.divf %5, %6 : vector<8x1xf32>
    %8 = vector.broadcast %7 : vector<8x1xf32> to vector<8x32xf32>
    %9 = arith.subf %1, %8 : vector<8x32xf32>
    %10 = arith.mulf %9, %9 : vector<8x32xf32>
    %cst_7 = arith.constant dense<0.000000e+00> : vector<8xf32>
    %11 = vector.multi_reduction <add>, %10, %cst_7 [1] : vector<8x32xf32> to vector<8xf32>
    %12 = vector.shape_cast %11 : vector<8xf32> to vector<8x1xf32>
    %cst_8 = arith.constant 3.200000e+01 : f32
    %13 = vector.broadcast %cst_8 : f32 to vector<8x1xf32>
    %14 = arith.divf %12, %13 : vector<8x1xf32>
    %15 = vector.broadcast %7 : vector<8x1xf32> to vector<8x32xf32>
    %16 = arith.subf %1, %15 : vector<8x32xf32>
    %cst_9 = arith.constant 9.99999974E-6 : f32
    %17 = vector.broadcast %cst_9 : f32 to vector<8x1xf32>
    %18 = arith.addf %14, %17 : vector<8x1xf32>
    %19 = math.rsqrt %18 : vector<8x1xf32>
    %20 = vector.broadcast %19 : vector<8x1xf32> to vector<8x32xf32>
    %21 = arith.mulf %16, %20 : vector<8x32xf32>
    %22 = vector.broadcast %2 : vector<1x32xf32> to vector<8x32xf32>
    %23 = arith.mulf %21, %22 : vector<8x32xf32>
    %24 = vector.broadcast %3 : vector<1x32xf32> to vector<8x32xf32>
    %25 = arith.addf %23, %24 : vector<8x32xf32>
    %26 = arith.truncf %25 : vector<8x32xf32> to vector<8x32xbf16>
    %c0_10 = arith.constant 0 : index
    %c0_11 = arith.constant 0 : index
    %27 = vector.load %arg6[%c0_10, %c0_11] : memref<32x96xbf16, #tpu.memory_space<vmem>>, vector<32x96xbf16>
    %cst_12 = arith.constant dense<0.000000e+00> : vector<8x96xf32>
    %28 = tpu.matmul %26, %27, %cst_12 {dimension_numbers = #tpu.dot_dimension_numbers<[1], [0], [0], [1], [0, 0, 1, 1], [], []>} : vector<8x32xbf16>, vector<32x96xbf16>, vector<8x96xf32> -> vector<8x96xf32>
    %c0_13 = arith.constant 0 : index
    %c0_14 = arith.constant 0 : index
    %29 = vector.load %arg7[%c0_13, %c0_14] : memref<1x96xf32, #tpu.memory_space<vmem>>, vector<1x96xf32>
    %30 = vector.broadcast %29 : vector<1x96xf32> to vector<8x96xf32>
    %31 = arith.addf %28, %30 : vector<8x96xf32>
    %32 = vector.extract_strided_slice %31 {offsets = [0, 0], sizes = [8, 32], strides = [1, 1]} : vector<8x96xf32> to vector<8x32xf32>
    %33 = arith.truncf %32 : vector<8x32xf32> to vector<8x32xbf16>
    %c0_15 = arith.constant 0 : index
    %c0_16 = arith.constant 0 : index
    %c0_17 = arith.constant 0 : index
    %34 = vector.load %arg8[%c0_15, %c0_16, %c0_17] : memref<1x8x32xbf16, #tpu.memory_space<vmem>>, vector<1x8x32xbf16>
    %35 = vector.shape_cast %34 : vector<1x8x32xbf16> to vector<8x32xbf16>
    %36 = vector.shape_cast %33 : vector<8x32xbf16> to vector<1x8x32xbf16>
    tpu.vector_store %arg8[%c0_15, %c0_16, %c0_17], %36 {strides = array<i32>} : memref<1x8x32xbf16, #tpu.memory_space<vmem>>, vector<1x8x32xbf16>,
    %37 = vector.extract_strided_slice %31 {offsets = [0, 32], sizes = [8, 32], strides = [1, 1]} : vector<8x96xf32> to vector<8x32xf32>
    %38 = arith.truncf %37 : vector<8x32xf32> to vector<8x32xbf16>
    %c0_18 = arith.constant 0 : index
    %c0_19 = arith.constant 0 : index
    %c0_20 = arith.constant 0 : index
    %39 = vector.load %arg9[%c0_18, %c0_19, %c0_20] : memref<1x8x32xbf16, #tpu.memory_space<vmem>>, vector<1x8x32xbf16>
    %40 = vector.shape_cast %39 : vector<1x8x32xbf16> to vector<8x32xbf16>
    %41 = vector.shape_cast %38 : vector<8x32xbf16> to vector<1x8x32xbf16>
    tpu.vector_store %arg9[%c0_18, %c0_19, %c0_20], %41 {strides = array<i32>} : memref<1x8x32xbf16, #tpu.memory_space<vmem>>, vector<1x8x32xbf16>,
    %42 = vector.extract_strided_slice %31 {offsets = [0, 64], sizes = [8, 32], strides = [1, 1]} : vector<8x96xf32> to vector<8x32xf32>
    %c0_21 = arith.constant 0 : index
    %c0_22 = arith.constant 0 : index
    %c0_23 = arith.constant 0 : index
    %43 = vector.load %arg3[%c0_21, %c0_22, %c0_23] : memref<1x8x32xbf16, #tpu.memory_space<vmem>>, vector<1x8x32xbf16>
    %44 = vector.shape_cast %43 : vector<1x8x32xbf16> to vector<8x32xbf16>
    %45 = arith.extf %44 : vector<8x32xbf16> to vector<8x32xf32>
    %46 = arith.addf %42, %45 : vector<8x32xf32>
    %47 = arith.truncf %46 : vector<8x32xf32> to vector<8x32xbf16>
    %c0_24 = arith.constant 0 : index
    %c0_25 = arith.constant 0 : index
    %c0_26 = arith.constant 0 : index
    %48 = vector.load %arg10[%c0_24, %c0_25, %c0_26] : memref<1x8x32xbf16, #tpu.memory_space<vmem>>, vector<1x8x32xbf16>
    %49 = vector.shape_cast %48 : vector<1x8x32xbf16> to vector<8x32xbf16>
    %50 = vector.shape_cast %47 : vector<8x32xbf16> to vector<1x8x32xbf16>
    tpu.vector_store %arg10[%c0_24, %c0_25, %c0_26], %50 {strides = array<i32>} : memref<1x8x32xbf16, #tpu.memory_space<vmem>>, vector<1x8x32xbf16>,
    return
  }
  func.func @transform_0(%arg0: i32, %arg1: i32) -> (i32, i32, i32) {
    %c0_i32 = arith.constant 0 : i32
    %c0_i32_0 = arith.constant 0 : i32
    return %arg0, %arg1, %c0_i32 : i32, i32, i32
  }
  func.func @transform_1(%arg0: i32, %arg1: i32) -> (i32, i32, i32) {
    %c0_i32 = arith.constant 0 : i32
    %c0_i32_0 = arith.constant 0 : i32
    return %arg0, %arg1, %c0_i32 : i32, i32, i32
  }
  func.func @transform_2(%arg0: i32, %arg1: i32) -> (i32, i32) {
    %c0_i32 = arith.constant 0 : i32
    %c0_i32_0 = arith.constant 0 : i32
    %c0_i32_1 = arith.constant 0 : i32
    return %c0_i32, %c0_i32_0 : i32, i32
  }
  func.func @transform_3(%arg0: i32, %arg1: i32) -> (i32, i32) {
    %c0_i32 = arith.constant 0 : i32
    %c0_i32_0 = arith.constant 0 : i32
    %c0_i32_1 = arith.constant 0 : i32
    return %c0_i32, %c0_i32_0 : i32, i32
  }
  func.func @transform_4(%arg0: i32, %arg1: i32) -> (i32, i32) {
    %c0_i32 = arith.constant 0 : i32
    %c0_i32_0 = arith.constant 0 : i32
    %c0_i32_1 = arith.constant 0 : i32
    return %c0_i32, %c0_i32_0 : i32, i32
  }
  func.func @transform_5(%arg0: i32, %arg1: i32) -> (i32, i32) {
    %c0_i32 = arith.constant 0 : i32
    %c0_i32_0 = arith.constant 0 : i32
    %c0_i32_1 = arith.constant 0 : i32
    return %c0_i32, %c0_i32_0 : i32, i32
  }
  func.func @transform_6(%arg0: i32, %arg1: i32) -> (i32, i32, i32) {
    %c0_i32 = arith.constant 0 : i32
    %c0_i32_0 = arith.constant 0 : i32
    return %arg0, %arg1, %c0_i32 : i32, i32, i32
  }
  func.func @transform_7(%arg0: i32, %arg1: i32) -> (i32, i32, i32) {
    %c0_i32 = arith.constant 0 : i32
    %c0_i32_0 = arith.constant 0 : i32
    return %arg0, %arg1, %c0_i32 : i32, i32, i32
  }
  func.func @transform_8(%arg0: i32, %arg1: i32) -> (i32, i32, i32) {
    %c0_i32 = arith.constant 0 : i32
    %c0_i32_0 = arith.constant 0 : i32
    return %arg0, %arg1, %c0_i32 : i32, i32, i32
  }
}

module attributes {stable_mosaic.version = 11 : i64} {
  func.func @final_ln_kernel(%arg0: i32, %arg1: memref<16x32xf32, #tpu.memory_space<vmem>>, %arg2: memref<1x32xf32, #tpu.memory_space<vmem>>, %arg3: memref<1x32xf32, #tpu.memory_space<vmem>>, %arg4: memref<16x32xbf16, #tpu.memory_space<vmem>>) attributes {dimension_semantics = [#tpu.dimension_semantics<parallel>], iteration_bounds = array<i64: 1>, scalar_prefetch = 0 : i64, scratch_operands = 0 : i64, tpu.core_type = #tpu.core_type<tc>, window_params = [{transform_indices = @transform_0, window_bounds = array<i64: 16, 32>}, {pipeline_mode = #tpu.pipeline_mode<synchronous>, transform_indices = @transform_1, window_bounds = array<i64: 1, 32>}, {pipeline_mode = #tpu.pipeline_mode<synchronous>, transform_indices = @transform_2, window_bounds = array<i64: 1, 32>}, {transform_indices = @transform_3, window_bounds = array<i64: 16, 32>}]} {
    %c0 = arith.constant 0 : index
    %c0_0 = arith.constant 0 : index
    %0 = vector.load %arg1[%c0, %c0_0] : memref<16x32xf32, #tpu.memory_space<vmem>>, vector<16x32xf32>
    %c0_1 = arith.constant 0 : index
    %c0_2 = arith.constant 0 : index
    %1 = vector.load %arg2[%c0_1, %c0_2] : memref<1x32xf32, #tpu.memory_space<vmem>>, vector<1x32xf32>
    %c0_3 = arith.constant 0 : index
    %c0_4 = arith.constant 0 : index
    %2 = vector.load %arg3[%c0_3, %c0_4] : memref<1x32xf32, #tpu.memory_space<vmem>>, vector<1x32xf32>
    %cst = arith.constant dense<0.000000e+00> : vector<16xf32>
    %3 = vector.multi_reduction <add>, %0, %cst [1] : vector<16x32xf32> to vector<16xf32>
    %4 = vector.shape_cast %3 : vector<16xf32> to vector<16x1xf32>
    %cst_5 = arith.constant 3.200000e+01 : f32
    %5 = vector.broadcast %cst_5 : f32 to vector<16x1xf32>
    %6 = arith.divf %4, %5 : vector<16x1xf32>
    %7 = vector.broadcast %6 : vector<16x1xf32> to vector<16x32xf32>
    %8 = arith.subf %0, %7 : vector<16x32xf32>
    %9 = arith.mulf %8, %8 : vector<16x32xf32>
    %cst_6 = arith.constant dense<0.000000e+00> : vector<16xf32>
    %10 = vector.multi_reduction <add>, %9, %cst_6 [1] : vector<16x32xf32> to vector<16xf32>
    %11 = vector.shape_cast %10 : vector<16xf32> to vector<16x1xf32>
    %cst_7 = arith.constant 3.200000e+01 : f32
    %12 = vector.broadcast %cst_7 : f32 to vector<16x1xf32>
    %13 = arith.divf %11, %12 : vector<16x1xf32>
    %14 = vector.broadcast %6 : vector<16x1xf32> to vector<16x32xf32>
    %15 = arith.subf %0, %14 : vector<16x32xf32>
    %cst_8 = arith.constant 9.99999974E-6 : f32
    %16 = vector.broadcast %cst_8 : f32 to vector<16x1xf32>
    %17 = arith.addf %13, %16 : vector<16x1xf32>
    %18 = math.rsqrt %17 : vector<16x1xf32>
    %19 = vector.broadcast %18 : vector<16x1xf32> to vector<16x32xf32>
    %20 = arith.mulf %15, %19 : vector<16x32xf32>
    %21 = vector.broadcast %1 : vector<1x32xf32> to vector<16x32xf32>
    %22 = arith.mulf %20, %21 : vector<16x32xf32>
    %23 = vector.broadcast %2 : vector<1x32xf32> to vector<16x32xf32>
    %24 = arith.addf %22, %23 : vector<16x32xf32>
    %25 = arith.truncf %24 : vector<16x32xf32> to vector<16x32xbf16>
    %c0_9 = arith.constant 0 : index
    %c0_10 = arith.constant 0 : index
    %26 = vector.load %arg4[%c0_9, %c0_10] : memref<16x32xbf16, #tpu.memory_space<vmem>>, vector<16x32xbf16>
    tpu.vector_store %arg4[%c0_9, %c0_10], %25 {strides = array<i32>} : memref<16x32xbf16, #tpu.memory_space<vmem>>, vector<16x32xbf16>,
    return
  }
  func.func @transform_0(%arg0: i32) -> (i32, i32) {
    %c0_i32 = arith.constant 0 : i32
    %c0_i32_0 = arith.constant 0 : i32
    return %arg0, %c0_i32 : i32, i32
  }
  func.func @transform_1(%arg0: i32) -> (i32, i32) {
    %c0_i32 = arith.constant 0 : i32
    %c0_i32_0 = arith.constant 0 : i32
    %c0_i32_1 = arith.constant 0 : i32
    return %c0_i32, %c0_i32_0 : i32, i32
  }
  func.func @transform_2(%arg0: i32) -> (i32, i32) {
    %c0_i32 = arith.constant 0 : i32
    %c0_i32_0 = arith.constant 0 : i32
    %c0_i32_1 = arith.constant 0 : i32
    return %c0_i32, %c0_i32_0 : i32, i32
  }
  func.func @transform_3(%arg0: i32) -> (i32, i32) {
    %c0_i32 = arith.constant 0 : i32
    %c0_i32_0 = arith.constant 0 : i32
    return %arg0, %c0_i32 : i32, i32
  }
}

module attributes {stable_mosaic.version = 11 : i64} {
  func.func @lm_head_kernel(%arg0: i32, %arg1: i32, %arg2: memref<16x32xbf16, #tpu.memory_space<vmem>>, %arg3: memref<64x32xbf16, #tpu.memory_space<vmem>>, %arg4: memref<16x64xf32, #tpu.memory_space<vmem>>) attributes {dimension_semantics = [#tpu.dimension_semantics<parallel>, #tpu.dimension_semantics<parallel>], iteration_bounds = array<i64: 1, 1>, scalar_prefetch = 0 : i64, scratch_operands = 0 : i64, tpu.core_type = #tpu.core_type<tc>, window_params = [{transform_indices = @transform_0, window_bounds = array<i64: 16, 32>}, {transform_indices = @transform_1, window_bounds = array<i64: 64, 32>}, {transform_indices = @transform_2, window_bounds = array<i64: 16, 64>}]} {
    %c0 = arith.constant 0 : index
    %c0_0 = arith.constant 0 : index
    %0 = vector.load %arg2[%c0, %c0_0] : memref<16x32xbf16, #tpu.memory_space<vmem>>, vector<16x32xbf16>
    %c0_1 = arith.constant 0 : index
    %c0_2 = arith.constant 0 : index
    %1 = vector.load %arg3[%c0_1, %c0_2] : memref<64x32xbf16, #tpu.memory_space<vmem>>, vector<64x32xbf16>
    %cst = arith.constant dense<0.000000e+00> : vector<16x64xf32>
    %2 = tpu.matmul %0, %1, %cst {dimension_numbers = #tpu.dot_dimension_numbers<[1], [1], [0], [0], [0, 0, 1, 0], [], []>} : vector<16x32xbf16>, vector<64x32xbf16>, vector<16x64xf32> -> vector<16x64xf32>
    %c0_3 = arith.constant 0 : index
    %c0_4 = arith.constant 0 : index
    %3 = vector.load %arg4[%c0_3, %c0_4] : memref<16x64xf32, #tpu.memory_space<vmem>>, vector<16x64xf32>
    tpu.vector_store %arg4[%c0_3, %c0_4], %2 {strides = array<i32>} : memref<16x64xf32, #tpu.memory_space<vmem>>, vector<16x64xf32>,
    return
  }
  func.func @transform_0(%arg0: i32, %arg1: i32) -> (i32, i32) {
    %c0_i32 = arith.constant 0 : i32
    %c0_i32_0 = arith.constant 0 : i32
    return %arg1, %c0_i32 : i32, i32
  }
  func.func @transform_1(%arg0: i32, %arg1: i32) -> (i32, i32) {
    %c0_i32 = arith.constant 0 : i32
    %c0_i32_0 = arith.constant 0 : i32
    return %arg0, %c0_i32 : i32, i32
  }
  func.func @transform_2(%arg0: i32, %arg1: i32) -> (i32, i32) {
    %c0_i32 = arith.constant 0 : i32
    return %arg1, %arg0 : i32, i32
  }
}

</mosaic_0001>

<bundles_post_ra>
// kernel: gpt2_resv_forward.8
= control target key start
LH: loop header
LB: loop body
LE: loop exit
PB: predicated region body
PF: predicated region fallthrough
CT: control target
= control target key end

     0   :  { %s742_s24 = smov 0   ;;  %s744_s25 = smov 0   ;;  %s803_s0 = inlined_call_operand.vmem [shape: f32[2,8,32], index: 0, kind: input, shape index: {}]   ;;  %s804_s1 = inlined_call_operand.vmem [shape: f32[1,32], index: 1, kind: input, shape index: {}]   ;;  %s805_s2 = inlined_call_operand.vmem [shape: f32[1,32], index: 2, kind: input, shape index: {}]   ;;  %s806_s3 = inlined_call_operand.vmem [shape: bf16[32,96], index: 3, kind: input, shape index: {}]   ;;  %s807_s4 = inlined_call_operand.vmem [shape: f32[1,96], index: 4, kind: input, shape index: {}]   ;;  %s808_s5 = inlined_call_operand.vmem [shape: bf16[2,8,32], index: 5, kind: output, shape index: {0}]   ;;  %s809_s6 = inlined_call_operand.vmem [shape: bf16[2,8,32], index: 6, kind: output, shape index: {1}]   ;;  %s810_s7 = inlined_call_operand.vmem [shape: bf16[2,8,32], index: 7, kind: output, shape index: {2}]  }
   0x1   :  { %s746_s26 = smov 0  }
   0x2 LB: > { %s30_s27 = sadd.s32 1, %s692_s25  ;;  %p616_p0 = scmp.ge.s32.totalorder %s696_s26, 1  ;;  %s696_s26 = sphi %s746_s26, %s18_s26   ;;  %s692_s25 = sphi %s744_s25, %s812_s25   ;;  %s688_s24 = sphi %s742_s24, %s811_s24  }
   0x3   : > { %p32_p1 = scmp.ge.s32.totalorder %s30_s27, 2  ;;  %p264_p2 = scmp.lt.s32.totalorder %s696_s26, 3 }
   0x5   : > { %s814_s27 = smov (%p32_p1, %s30_s27), 0  ;;  %p265_p3 = pnand %p616_p0, %p264_p2 }
   0x6   : > { %p314_p4 = scmp.lt.s32.totalorder (!%p265_p3), %s688_s24, 1  ;;  %vm346_vm0 = vcmask (!%p265_p3), 261120   ;;  %v670_v7 = vld [vmem:[%s806_s3] sm:$0xff] (!%p265_p3)   ;;  %v698_v8 = vmov (!%p265_p3), 0.0   ;;  %v671_v9 = vld [vmem:[%s806_s3 + $0x8] sm:$0xff] (!%p265_p3)   ;;  %vm699_vm1 = vmmov (!%p265_p3), 0  }
   0x7   : > { %268 = sbr.rel (%p265_p3) target bundleno = 669 (0x29d), region = 40  ;;  %634 = vmatprep.subr.bf16.mxu0 (!%p265_p3), %v698_v8  ;;  %638 = vmatprep.mubr.msk.bf16.mxu0 (!%p265_p3), %vm699_vm1, %v698_v8  ;;  %v621_v14 = vld [vmem:[%s804_s1] ss:$0 sm:$0xff] (!%p265_p3)  ;;  %vm443_vm2 = vcmask (!%p265_p3), 257024   ;;  %s700_s23 = smov (!%p265_p3), 96  }
   0x8   : > { %635 = vmatpush3.bf16.msra.mxu0 (!%p265_p3), %v670_v7  ;;  %v622_v16 = vld [vmem:[%s805_s2] ss:$0 sm:$0xff] (!%p265_p3) }
   0x9   : > { %636 = vmatprep.subr.bf16.mxu0 (!%p265_p3), %v698_v8  ;;  %v623_v20 = vld [vmem:[%s807_s4] ss:$0 sm:$0xff] (!%p265_p3) }
   0xc   : > { %637 = vmatpush3.bf16.msra.mxu0 (!%p265_p3), %v671_v9 }
   0xe   : > { %s816_s24 = smov (!%p314_p4, %s688_s24), 1 }
   0xf   : > { %s617_s28 = sshll.u32 %s816_s24, 3  ;;  %s618_s19 = sshll.u32 %s816_s24, 2 }
  0x10   : > { %s320_s8 = scalar_lea.vmem %s803_s0, %s617_s28  ;;  %s327_s22 = scalar_lea.vmem %s808_s5, %s618_s19 }
  0x11   : > { %v343_v0 = vld [vmem:[%s320_s8] sm:$0xff]  ;;  %s701_s28 = smov 64   ;;  %s334_s24 = scalar_lea.vmem %s809_s6, %s618_s19 }
  0x12   : > { %v347_v1 = vsel %vm346_vm0, %v343_v0, 0.0  ;;  %s341_s10 = scalar_lea.vmem %s810_s7, %s618_s19 }
  0x13   : > { %348 = vadd.xlane.f32.xlu0 %v347_v1 }
  0xa0   : > { %v349_v2 = vpop.xlane.xlu0 %348 }
  0xa1   : > { %v351_v3 = vmul.f32 0.03125, %v349_v2 }
  0xa3   : > { %v352_v4 = vsub.f32 %v343_v0, %v351_v3 }
  0xa5   : > { %v353_v5 = vmul.f32 %v352_v4, %v352_v4 }
  0xa7   : > { %v354_v6 = vsel %vm346_vm0, %v353_v5, 0.0 }
  0xa8   : > { %355 = vadd.xlane.f32.xlu0 %v354_v6 }
 0x135   : > { %v356_v10 = vpop.xlane.xlu0 %355 }
 0x136   : > { %v357_v11 = vmul.f32 0.03125, %v356_v10 }
 0x138   : > { %v358_v12 = vadd.f32 1e-05, %v357_v11 }
 0x13a   : > { %672 = vrsqrt.f32 %v358_v12 }
 0x144   : > { %v673_v13 = vpop.eup %672 }
 0x145   : > { %v360_v15 = vmul.f32 %v673_v13, %v352_v4 }
 0x147   : > { %v367_v17 = vmul.f32 %v621_v14, %v360_v15 }
 0x149   : > { %v374_v18 = vadd.f32 %v622_v16, %v367_v17 }
 0x14b   : > { %v375_v19 = vpack.c.bf16 %v374_v18, %v374_v18 }
 0x14d   : > { %639 = vmatmul.mubr.msk.bf16.vlgmr.msra.gmra.mrb[0].mxu0 %vm346_vm0, %v375_v19 }
 0x220   : > { %v436_v21 = vpop.f32.mrb[0].mxu0 }
 0x221   : > { %v437_v22 = vadd.f32 %v623_v20, %v436_v21  ;;  %v640_v23 = vpop.f32.mrb[1].mxu0 }
 0x222   : > { %v439_v24 = vpop.f32.mrb[2].mxu0 }
 0x223   : > { %v442_v25 = vpack.c.bf16 %v437_v22, %v437_v22  ;;  %v641_v26 = vpop.f32.mrb[3].mxu0 }
 0x225   : > { %448 = vrot.lane.b32.xlu1 %v442_v25, %s700_s23  ;;  %444 = vst.msk [vmem:[%s327_s22] sm:$0xf] %vm443_vm2, %v442_v25 }
 0x229   : > { %452 = vrot.lane.b32.xlu1 %v442_v25, %s701_s28 }
 0x297   : > { %v449_v27 = vpop.permute.xlu1 %448 }
 0x298   : > { %451 = vst.msk [vmem:[%s334_s24] sm:$0xf] %vm443_vm2, %v449_v27 }
 0x29b   : > { %v453_v28 = vpop.permute.xlu1 %452 }
 0x29c   : > { %455 = vst.msk [vmem:[%s341_s10] sm:$0xf] %vm443_vm2, %v453_v28 }
 0x29d PF: > { %s18_s26 = sadd.s32 1, %s696_s26   ;;  %s811_s24 = smov %s692_s25 }
 0x29e   : > { %p15_p5 = scmp.ge.s32.totalorder %s18_s26, 4   ;;  %s812_s25 = smov %s814_s27 }
 0x2a0   :  { %17 = sbr.rel (!%p15_p5) target bundleno = 2 (0x2), region = 94 }

// kernel: gpt2_resv_forward.10
= control target key start
LH: loop header
LB: loop body
LE: loop exit
PB: predicated region body
PF: predicated region fallthrough
CT: control target
= control target key end

     0   :  { %s1148_s13 = smov 0   ;;  %s1150_s14 = smov 0   ;;  %s1267_s0 = inlined_call_operand.vmem [shape: f32[2,8,32], index: 0, kind: input, shape index: {}]   ;;  %s1268_s1 = inlined_call_operand.vmem [shape: bf16[2,8,32], index: 1, kind: input, shape index: {}]   ;;  %s1269_s2 = inlined_call_operand.vmem [shape: bf16[32,32], index: 2, kind: input, shape index: {}]   ;;  %s1270_s3 = inlined_call_operand.vmem [shape: f32[1,32], index: 3, kind: input, shape index: {}]   ;;  %s1271_s4 = inlined_call_operand.vmem [shape: f32[1,32], index: 4, kind: input, shape index: {}]   ;;  %s1272_s5 = inlined_call_operand.vmem [shape: f32[1,32], index: 5, kind: input, shape index: {}]   ;;  %s1273_s6 = inlined_call_operand.vmem [shape: bf16[32,128], index: 6, kind: input, shape index: {}]   ;;  %s1274_s7 = inlined_call_operand.vmem [shape: f32[1,128], index: 7, kind: input, shape index: {}]   ;;  %s1275_s8 = inlined_call_operand.vmem [shape: bf16[128,32], index: 8, kind: input, shape index: {}]   ;;  %s1276_s9 = inlined_call_operand.vmem [shape: f32[1,32], index: 9, kind: input, shape index: {}]   ;;  %s1277_s10 = inlined_call_operand.vmem [shape: f32[2,8,32], index: 10, kind: output, shape index: {}]  }
   0x1   :  { %s1152_s15 = smov 0  }
   0x2 LB: > { %s39_s16 = sadd.s32 1, %s1084_s14  ;;  %p945_p0 = scmp.ge.s32.totalorder %s1088_s15, 1  ;;  %s1088_s15 = sphi %s1152_s15, %s20_s15   ;;  %s1084_s14 = sphi %s1150_s14, %s1279_s14   ;;  %s1080_s13 = sphi %s1148_s13, %s1278_s13  }
   0x3   : > { %p41_p1 = scmp.ge.s32.totalorder %s39_s16, 2  ;;  %p379_p2 = scmp.lt.s32.totalorder %s1088_s15, 3 }
   0x5   : > { %s1281_s16 = smov (%p41_p1, %s39_s16), 0  ;;  %p380_p3 = pnand %p945_p0, %p379_p2 }
   0x6   : > { %v1048_v0 = vld [vmem:[%s1269_s2] sm:$0xff] (!%p380_p3)   ;;  %v1090_v1 = vmov (!%p380_p3), 0.0   ;;  %v1049_v2 = vld [vmem:[%s1269_s2 + $0x8] sm:$0xff] (!%p380_p3)   ;;  %vm1091_vm0 = vmmov (!%p380_p3), 0   ;;  %p440_p4 = scmp.lt.s32.totalorder (!%p380_p3), %s1080_s13, 1  ;;  %vm497_vm1 = vcmask (!%p380_p3), 261120  }
   0x7   : > { %383 = sbr.rel (%p380_p3) target bundleno = 1047 (0x417), region = 60  ;;  %985 = vmatprep.subr.bf16.mxu1 (!%p380_p3), %v1090_v1  ;;  %1001 = vmatprep.subr.bf16.mxu0 (!%p380_p3), %v1090_v1  ;;  %584 = vst.msk [vmem:[#allocation4] sm:$0xff] (!%p380_p3), %vm497_vm1, %v1090_v1  ;;  %v952_v6 = vld [vmem:[%s1270_s3] ss:$0 sm:$0xff] (!%p380_p3)  ;;  %v1051_v19 = vld [vmem:[%s1273_s6 + $0x8] sm:$0xff] (!%p380_p3)   ;;  %vm582_vm2 = vcmask (!%p380_p3), 257024  }
   0x8   : > { %986 = vmatpush3.bf16.msra.mxu1 (!%p380_p3), %v1048_v0  ;;  %989 = vmatprep.mubr.msk.bf16.mxu1 (!%p380_p3), %vm1091_vm0, %v1090_v1  ;;  %v1050_v18 = vld [vmem:[%s1273_s6] sm:$0xff] (!%p380_p3)   ;;  %v1053_v32 = vld [vmem:[%s1275_s8 + $0x8] sm:$0xff] (!%p380_p3)   ;;  %v1054_v33 = vld [vmem:[%s1275_s8 + $0x10] sm:$0xff] (!%p380_p3)  }
   0x9   : > { %987 = vmatprep.subr.bf16.mxu1 (!%p380_p3), %v1090_v1  ;;  %1017 = vmatprep.mubr.msk.bf16.mxu0 (!%p380_p3), %vm1091_vm0, %v1090_v1  ;;  %v953_v24 = vld [vmem:[%s1271_s4] ss:$0 sm:$0xff] (!%p380_p3)  ;;  %v1055_v34 = vld [vmem:[%s1275_s8 + $0x18] sm:$0xff] (!%p380_p3)   ;;  %v1057_v36 = vld [vmem:[%s1275_s8 + $0x28] sm:$0xff] (!%p380_p3)  }
   0xa   : > { %v954_v26 = vld [vmem:[%s1272_s5] ss:$0 sm:$0xff] (!%p380_p3)  ;;  %v1058_v37 = vld [vmem:[%s1275_s8 + $0x30] sm:$0xff] (!%p380_p3)   ;;  %v1059_v38 = vld [vmem:[%s1275_s8 + $0x38] sm:$0xff] (!%p380_p3)  }
   0xb   : > { %v1052_v31 = vld [vmem:[%s1275_s8] sm:$0xff] (!%p380_p3)  }
   0xc   : > { %988 = vmatpush3.bf16.msra.mxu1 (!%p380_p3), %v1049_v2  ;;  %1002 = vmatpush3.bf16.msra.mxu0 (!%p380_p3), %v1052_v31  ;;  %v1056_v35 = vld [vmem:[%s1275_s8 + $0x20] sm:$0xff] (!%p380_p3)  }
   0xd   : > { %993 = vmatprep.subr.bf16.mxu1 (!%p380_p3), %v1090_v1  ;;  %1003 = vmatprep.subr.bf16.mxu0 (!%p380_p3), %v1090_v1  ;;  %v955_v39 = vld [vmem:[%s1274_s7] ss:$0 sm:$0xff] (!%p380_p3) }
   0xe   : > { %s1283_s13 = smov (!%p440_p4, %s1080_s13), 1 }
   0xf   : > { %s947_s21 = sshll.u32 %s1283_s13, 2  ;;  %s946_s25 = sshll.u32 %s1283_s13, 3 }
  0x10   : > { %s453_s24 = scalar_lea.vmem %s1268_s1, %s947_s21  ;;  %s446_s28 = scalar_lea.vmem %s1267_s0, %s946_s25  ;;  %1004 = vmatpush3.bf16.msra.mxu0 %v1053_v32 }
  0x11   : > { %v480_v3 = vld [vmem:[%s453_s24] sm:$0xf]  ;;  %1005 = vmatprep.subr.bf16.mxu0 %v1090_v1  ;;  %s473_s11 = scalar_lea.vmem %s1277_s10, %s946_s25 }
  0x12   : > { %990 = vmatmul.mubr.msk.bf16.vlgmr.msra.gmra.mrb[0].mxu1 %vm497_vm1, %v480_v3  ;;  %v479_v4 = vld [vmem:[%s446_s28] sm:$0xff] }
  0x13   : > { %997 = vmatprep.mubr.msk.bf16.mxu1 %vm1091_vm0, %v1090_v1  ;;  %994 = vmatpush3.bf16.msra.mxu1 %v1050_v18 }
  0x14   : > { %995 = vmatprep.subr.bf16.mxu1 %v1090_v1  ;;  %1006 = vmatpush3.bf16.msra.mxu0 %v1054_v33 }
  0x15   : > { %1007 = vmatprep.subr.bf16.mxu0 %v1090_v1 }
  0x17   : > { %996 = vmatpush3.bf16.msra.mxu1 %v1051_v19 }
  0x18   : > { %1008 = vmatpush3.bf16.msra.mxu0 %v1055_v34 }
  0x19   : > { %1009 = vmatprep.subr.bf16.mxu0 %v1090_v1 }
  0x1c   : > { %1010 = vmatpush3.bf16.msra.mxu0 %v1056_v35 }
  0x1d   : > { %1011 = vmatprep.subr.bf16.mxu0 %v1090_v1 }
  0x20   : > { %1012 = vmatpush3.bf16.msra.mxu0 %v1057_v36 }
  0x21   : > { %1013 = vmatprep.subr.bf16.mxu0 %v1090_v1 }
  0x24   : > { %1014 = vmatpush3.bf16.msra.mxu0 %v1058_v37 }
  0x25   : > { %1015 = vmatprep.subr.bf16.mxu0 %v1090_v1  ;;  %v1092_v1 = vmov -1.0  }
  0x28   : > { %1016 = vmatpush3.bf16.msra.mxu0 %v1059_v38 }
  0xe5   : > { %v535_v5 = vpop.f32.mrb[0].mxu1 }
  0xe6   : > { %v541_v7 = vadd.f32 %v535_v5, %v479_v4  ;;  %v991_v8 = vpop.f32.mrb[1].mxu1 }
  0xe7   : > { %v538_v9 = vpop.f32.mrb[2].mxu1  ;;  %v653_v8 = vld [vmem:[#allocation4] sm:$0xff] }
  0xe8   : > { %v549_v10 = vadd.f32 %v952_v6, %v541_v7  ;;  %v992_v11 = vpop.f32.mrb[3].mxu1 }
  0xea   : > { %550 = vst.msk [vmem:[#allocation2] sm:$0xff] %vm497_vm1, %v549_v10  ;;  %v553_v12 = vsel %vm497_vm1, %v549_v10, 0.0 }
  0xeb   : > { %554 = vadd.xlane.f32.xlu0 %v553_v12 }
 0x178   : > { %v555_v13 = vpop.xlane.xlu0 %554 }
 0x179   : > { %v557_v14 = vmul.f32 0.03125, %v555_v13 }
 0x17b   : > { %v558_v15 = vsub.f32 %v549_v10, %v557_v14  ;;  %v791_v14 = vld [vmem:[#allocation2] sm:$0xff] }
 0x17d   : > { %v559_v16 = vmul.f32 %v558_v15, %v558_v15 }
 0x17f   : > { %v560_v17 = vsel %vm497_vm1, %v559_v16, 0.0  ;;  %v967_v16 = vld [vmem:[%s1276_s9] ss:$0 sm:$0xff] }
 0x180   : > { %561 = vadd.xlane.f32.xlu0 %v560_v17 }
 0x20d   : > { %v562_v20 = vpop.xlane.xlu0 %561 }
 0x20e   : > { %v563_v21 = vmul.f32 0.03125, %v562_v20 }
 0x210   : > { %v564_v22 = vadd.f32 1e-05, %v563_v21 }
 0x212   : > { %1060 = vrsqrt.f32 %v564_v22 }
 0x21c   : > { %v1061_v23 = vpop.eup %1060 }
 0x21d   : > { %v566_v25 = vmul.f32 %v1061_v23, %v558_v15 }
 0x21f   : > { %v573_v27 = vmul.f32 %v953_v24, %v566_v25 }
 0x221   : > { %v580_v28 = vadd.f32 %v954_v26, %v573_v27 }
 0x223   : > { %v581_v29 = vpack.c.bf16 %v580_v28, %v580_v28 }
 0x225   : > { %583 = vst.msk [vmem:[#allocation3] sm:$0xf] %vm582_vm2, %v581_v29 }
 0x22c   : > { %v585_v30 = vld [vmem:[#allocation3] sm:$0xf] }
 0x22d   : > { %998 = vmatmul.mubr.msk.bf16.vlgmr.msra.gmra.mrb[4].mxu1 %vm497_vm1, %v585_v30 }
 0x300   : > { %v647_v40 = vpop.f32.mrb[4].mxu1 }
 0x301   : > { %v648_v41 = vadd.f32 %v955_v39, %v647_v40  ;;  %v999_v42 = vpop.f32.mrb[5].mxu1 }
 0x302   : > { %v650_v43 = vpop.f32.mrb[6].mxu1 }
 0x303   : > { %v655_v44 = vmul.f32 0.70710677, %v648_v41  ;;  %v1000_v45 = vpop.f32.mrb[7].mxu1  ;;  %v654_v4 = vmul.f32 0.5, %v648_v41 }
 0x305   : > { %v658_v46 = vand.u32 2147483647, %v655_v44  ;;  %vm656_vm3 = vcmp.ge.f32.partialorder %v655_v44, 0.0 }
 0x306   : > { %v657_v2 = vsel %vm656_vm3, 1.0, %v1092_v1 }
 0x307   : > { %v659_v47 = vmul.f32 0.3275911, %v658_v46  ;;  %v672_v49 = vsub.f32 0.0, %v658_v46 }
 0x309   : > { %v660_v48 = vadd.f32 1.0, %v659_v47  ;;  %v673_v51 = vmul.f32 %v672_v49, %v658_v46 }
 0x30b   : > { %1062 = vrcp.f32 %v660_v48  ;;  %v674_v54 = vmul.f32 1.442695, %v673_v51 }
 0x30d   : > { %1064 = vpow2.f32 %v674_v54 }
 0x315   : > { %v1063_v50 = vpop.eup %1062 }
 0x316   : > { %v663_v52 = vmul.f32 1.0614054, %v1063_v50 }
 0x317   : > { %v1065_v62 = vpop.eup %1064 }
 0x318   : > { %v664_v53 = vadd.f32 -1.4531521, %v663_v52 }
 0x31a   : > { %v665_v55 = vmul.f32 %v1063_v50, %v664_v53 }
 0x31c   : > { %v666_v56 = vadd.f32 1.4214138, %v665_v55 }
 0x31e   : > { %v667_v57 = vmul.f32 %v1063_v50, %v666_v56 }
 0x320   : > { %v668_v58 = vadd.f32 -0.28449672, %v667_v57 }
 0x322   : > { %v669_v59 = vmul.f32 %v1063_v50, %v668_v58 }
 0x324   : > { %v670_v60 = vadd.f32 0.2548296, %v669_v59 }
 0x326   : > { %v671_v61 = vmul.f32 %v1063_v50, %v670_v60 }
 0x328   : > { %v676_v63 = vmul.f32 %v1065_v62, %v671_v61 }
 0x32a   : > { %v677_v0 = vsub.f32 1.0, %v676_v63 }
 0x32c   : > { %v678_v3 = vmul.f32 %v677_v0, %v657_v2 }
 0x32e   : > { %v679_v5 = vadd.f32 1.0, %v678_v3 }
 0x330   : > { %v680_v6 = vmul.f32 %v679_v5, %v654_v4 }
 0x332   : > { %v681_v7 = vpack.c.bf16 %v680_v6, %v680_v6 }
 0x334   : > { %1018 = vmatmul.mubr.bf16.vlgmr.msra.gmra.mrb[0].mxu0 %v681_v7 }
 0x407   : > { %v780_v9 = vpop.f32.mrb[0].mxu0 }
 0x408   : > { %v786_v10 = vadd.f32 %v780_v9, %v653_v8  ;;  %v1019_v11 = vpop.f32.mrb[1].mxu0 }
 0x409   : > { %v783_v12 = vpop.f32.mrb[2].mxu0 }
 0x40a   : > { %787 = vst.msk [vmem:[#allocation4] sm:$0xff] %vm497_vm1, %v786_v10  ;;  %v1020_v13 = vpop.f32.mrb[3].mxu0 }
 0x411   : > { %v792_v15 = vld [vmem:[#allocation4] sm:$0xff] }
 0x412   : > { %v793_v17 = vadd.f32 %v792_v15, %v791_v14 }
 0x414   : > { %v801_v18 = vadd.f32 %v967_v16, %v793_v17 }
 0x416   : > { %802 = vst.msk [vmem:[%s473_s11] sm:$0xff] %vm497_vm1, %v801_v18 }
 0x417 PF: > { %s20_s15 = sadd.s32 1, %s1088_s15   ;;  %s1278_s13 = smov %s1084_s14 }
 0x418   : > { %p17_p5 = scmp.ge.s32.totalorder %s20_s15, 4   ;;  %s1279_s14 = smov %s1281_s16 }
 0x41a   :  { %19 = sbr.rel (!%p17_p5) target bundleno = 2 (0x2), region = 110 }

// kernel: gpt2_resv_forward.9
= control target key start
LH: loop header
LB: loop body
LE: loop exit
PB: predicated region body
PF: predicated region fallthrough
CT: control target
= control target key end

     0   :  { %s1201_s12 = smov 0   ;;  %s1203_s13 = smov 0   ;;  %s1378_s0 = inlined_call_operand.vmem [shape: bf16[2,8,32], index: 0, kind: input, shape index: {}]   ;;  %s1379_s1 = inlined_call_operand.vmem [shape: bf16[2,8,32], index: 1, kind: input, shape index: {}]   ;;  %s1380_s2 = inlined_call_operand.vmem [shape: bf16[2,8,32], index: 2, kind: input, shape index: {}]   ;;  %s1381_s3 = inlined_call_operand.vmem [shape: bf16[2,8,32], index: 3, kind: output, shape index: {}]  }
   0x1   :  { %s1205_s14 = smov 0  }
   0x2 LB: > { %s32_s15 = sadd.s32 1, %s1162_s13  ;;  %p997_p0 = scmp.ge.s32.totalorder %s1166_s14, 1  ;;  %s1166_s14 = sphi %s1205_s14, %s13_s14   ;;  %s1162_s13 = sphi %s1203_s13, %s1383_s13   ;;  %s1158_s12 = sphi %s1201_s12, %s1382_s12  }
   0x3   : > { %p34_p1 = scmp.ge.s32.totalorder %s32_s15, 2  ;;  %p206_p2 = scmp.lt.s32.totalorder %s1166_s14, 3 }
   0x5   : > { %s1385_s15 = smov (%p34_p1, %s32_s15), 0  ;;  %p207_p3 = pnand %p997_p0, %p206_p2 }
   0x6   : > { %p252_p4 = scmp.lt.s32.totalorder (!%p207_p3), %s1158_s12, 1  ;;  %v1168_v0 = vmov (!%p207_p3), 0.0   ;;  %vm1169_vm0 = vmmov (!%p207_p3), 0   ;;  %vm316_vm1 = vcmask (!%p207_p3), 64512   ;;  %vm293_vm2 = vcmask (!%p207_p3), 31744   ;;  %s1172_s23 = smov (!%p207_p3), 120  }
   0x7   : > { %210 = sbr.rel (%p207_p3) target bundleno = 1472 (0x5c0), region = 32  ;;  %1031 = vmatprep.subr.bf16.mxu0 (!%p207_p3), %v1168_v0  ;;  %1033 = vmatprep.mubr.msk.bf16.mxu0 (!%p207_p3), %vm1169_vm0, %v1168_v0  ;;  %v1170_v4 = vmov (!%p207_p3), -1e+30   ;;  %v306_v5 = vlaneseq (!%p207_p3)  ;;  %v1171_v15 = vmov (!%p207_p3), 0   ;;  %s1173_s24 = smov (!%p207_p3), 112   ;;  %vm445_vm4 = vcmask (!%p207_p3), 7168  }
   0x8   : > { %1037 = vmatprep.subr.bf16.mxu1 (!%p207_p3), %v1168_v0  ;;  %1039 = vmatprep.mubr.msk.bf16.mxu1 (!%p207_p3), %vm1169_vm0, %v1168_v0  ;;  %294 = vst.msk [vmem:[#allocation2] sm:$0xff] (!%p207_p3), %vm293_vm2, %v1170_v4  ;;  %s1174_s25 = smov (!%p207_p3), 104   ;;  %vm399_vm5 = vcmask (!%p207_p3), 1043456   ;;  %v1175_v63 = vmov (!%p207_p3), 1   ;;  %vm594_vm6 = vcmask (!%p207_p3), 15368   ;;  %vm734_vm7 = vcmask (!%p207_p3), 23568  }
   0x9   : > { %v1240_v6 = vshrl.u32 (!%p207_p3), %v306_v5, 7  ;;  %v1242_v7 = vand.u32 (!%p207_p3), 127, %v306_v5  ;;  %1116 = vset.pattern.permute.xlu0 (!%p207_p3), %v1171_v15  ;;  %1117 = vset.pattern.permute.xlu1 (!%p207_p3), %v1175_v63  ;;  %vm874_vm8 = vcmask (!%p207_p3), 31768   ;;  %vm295_vm9 = vcmask (!%p207_p3), 261120   ;;  %s1178_s29 = smov (!%p207_p3), 8   ;;  %s1179_s30 = smov (!%p207_p3), 16  }
   0xa   : > { %296 = vst.msk [vmem:[#allocation3] sm:$0xff] (!%p207_p3), %vm295_vm9, %v1168_v0  ;;  %297 = vst.msk [vmem:[#allocation4] sm:$0xff] (!%p207_p3), %vm295_vm9, %v1168_v0  ;;  %vm532_vm10 = vcmask (!%p207_p3), 130112   ;;  %s1180_s4 = smov (!%p207_p3), 24   ;;  %vm675_vm11 = vcmask (!%p207_p3), 195712   ;;  %vm815_vm12 = vcmask (!%p207_p3), 261312  }
   0xb   : > { %vm315_vm3 = vcmp.ge.s32.totalorder (!%p207_p3), %v1240_v6, %v1242_v7  ;;  %vm884_vm13 = vcmask (!%p207_p3), 257024  }
   0xe   : > { %s1387_s12 = smov (!%p252_p4, %s1158_s12), 1 }
   0xf   : > { %s1225_s16 = sshll.u32 %s1387_s12, 2  ;;  %v1257_v18 = vld [vmem:[#allocation2] sm:$0xff] }
  0x10   : > { %s267_s19 = scalar_lea.vmem %s1379_s1, %s1225_s16  ;;  %s258_s22 = scalar_lea.vmem %s1378_s0, %s1225_s16 }
  0x11   : > { %v303_v1 = vld [vmem:[%s267_s19] sm:$0xf]  ;;  %s278_s28 = scalar_lea.vmem %s1380_s2, %s1225_s16  ;;  %s287_s7 = scalar_lea.vmem %s1381_s3, %s1225_s16 }
  0x12   : > { %v321_v2 = vsel %vm316_vm1, %v303_v1, 0  ;;  %v302_v3 = vld [vmem:[%s258_s22] sm:$0xf]  ;;  %v1005_v16 = vcombine.low %v303_v1, %v303_v1  ;;  %v1176_v1 = vmov 2  }
  0x13   : > { %1032 = vmatpush3.bf16.xpose.msra.mxu0 %v321_v2  ;;  %v1004_v17 = vcombine.low %v302_v3, %v302_v3  ;;  %v1270_v22 = vld [vmem:[%s278_s28] sm:$0xf] }
  0x14   : > { %1049 = vmatprep.subr.bf16.mxu0 %v1168_v0  ;;  %455 = vrot.lane.b32.xlu1 %v1005_v16, %s1172_s23  ;;  %v401_v23 = vsel %vm399_vm5, %v1270_v22, 0  ;;  %v1007_v5 = vcombine.low %v1270_v22, %v1270_v22 }
  0x15   : > { %1038 = vmatpush3.bf16.msra.mxu1 %v401_v23 }
  0x16   : > { %1043 = vmatprep.subr.bf16.mxu1 %v1168_v0 }
  0x18   : > { %450 = vrot.lane.b32.xlu1 %v1004_v17, %s1172_s23 }
  0x1a   : > { %1034 = vmatmul.mubr.msk.bf16.vlgmr.msra.gmra.mrb[0].mxu0 %vm316_vm1, %v302_v3 }
  0x1b   : > { %1051 = vmatprep.mubr.msk.bf16.mxu0 %vm1169_vm0, %v1168_v0 }
  0x1c   : > { %598 = vrot.lane.b32.xlu1 %v1005_v16, %s1173_s24 }
  0x20   : > { %596 = vrot.lane.b32.xlu1 %v1004_v17, %s1173_s24 }
  0x24   : > { %738 = vrot.lane.b32.xlu1 %v1005_v16, %s1174_s25 }
  0x28   : > { %736 = vrot.lane.b32.xlu1 %v1004_v17, %s1174_s25 }
  0x86   : > { %v456_v27 = vpop.permute.xlu1 %455 }
  0x87   : > { %v461_v30 = vsel %vm316_vm1, %v456_v27, 0 }
  0x8a   : > { %v451_v28 = vpop.permute.xlu1 %450 }
  0x8e   : > { %v599_v32 = vpop.permute.xlu1 %598 }
  0x8f   : > { %v604_v34 = vsel %vm316_vm1, %v599_v32, 0 }
  0x92   : > { %v597_v33 = vpop.permute.xlu1 %596 }
  0x96   : > { %v739_v35 = vpop.permute.xlu1 %738 }
  0x97   : > { %v744_v36 = vsel %vm316_vm1, %v739_v35, 0 }
  0x9a   : > { %v737_v37 = vpop.permute.xlu1 %736 }
  0xed   : > { %v357_v8 = vpop.f32.mrb[0].mxu0 }
  0xee   : > { %v363_v9 = vmul.f32 0.35355338, %v357_v8  ;;  %v1035_v10 = vpop.f32.mrb[1].mxu0 }
  0xef   : > { %v360_v11 = vpop.f32.mrb[2].mxu0 }
  0xf0   : > { %v1036_v12 = vpop.f32.mrb[3].mxu0  ;;  %v364_v13 = vsel %vm315_vm3, %v363_v9, -1e+30  ;;  %v1177_v9 = vmov 3  }
  0xf1   : > { %v366_v14 = vsel %vm316_vm1, %v364_v13, -inf }
  0xf2   : > { %367 = vmax.xlane.f32.xlu0 %v366_v14 }
 0x17f   : > { %v368_v19 = vpop.xlane.xlu0 %367 }
 0x180   : > { %v1260_v20 = vmax.f32 %v1257_v18, %v368_v19 }
 0x182   : > { %v370_v21 = vsub.f32 %v1257_v18, %v1260_v20  ;;  %446 = vst.msk [vmem:[#allocation2] sm:$0xff] %vm445_vm4, %v1260_v20  ;;  %375 = vperm.xlu0 %1116, %v1260_v20  }
 0x184   : > { %v371_v14 = vmul.f32 1.442695, %v370_v21 }
 0x186   : > { %1118 = vset.pattern.permute.xlu0 %v1176_v1 }
 0x189   : > { %v505_v3 = vld [vmem:[#allocation2] sm:$0xff] }
 0x201   : > { %v376_v24 = vpop.permute.xlu0 %375 }
 0x202   : > { %v378_v25 = vsub.f32 %v364_v13, %v376_v24 }
 0x204   : > { %v379_v26 = vmul.f32 1.442695, %v378_v25 }
 0x206   : > { %1126 = vpow2.f32 %v379_v26 }
 0x210   : > { %v1275_v29 = vpop.eup %1126 }
 0x211   : > { %v395_v31 = vpack.c.bf16 %v1275_v29, %v1275_v29  ;;  %v388_v21 = vsel %vm316_vm1, %v1275_v29, 0.0 }
 0x213   : > { %1040 = vmatmul.mubr.msk.bf16.vlgmr.msra.gmra.mrb[0].mxu1 %vm316_vm1, %v395_v31 }
 0x214   : > { %1044 = vmatpush3.bf16.xpose.msra.mxu1 %v461_v30  ;;  %1045 = vmatprep.mubr.msk.bf16.mxu1 %vm1169_vm0, %v1168_v0 }
 0x215   : > { %1055 = vmatprep.subr.bf16.mxu1 %v1168_v0 }
 0x21b   : > { %1046 = vmatmul.mubr.msk.bf16.vlgmr.msra.gmra.mrb[4].mxu1 %vm316_vm1, %v451_v28 }
 0x21c   : > { %1056 = vmatpush3.bf16.xpose.msra.mxu1 %v604_v34  ;;  %1057 = vmatprep.mubr.msk.bf16.mxu1 %vm1169_vm0, %v1168_v0 }
 0x21d   : > { %1067 = vmatprep.subr.bf16.mxu1 %v1168_v0 }
 0x223   : > { %1058 = vmatmul.mubr.msk.bf16.vlgmr.msra.gmra.mrb[8].mxu1 %vm316_vm1, %v597_v33 }
 0x224   : > { %1068 = vmatpush3.bf16.xpose.msra.mxu1 %v744_v36  ;;  %1069 = vmatprep.mubr.msk.bf16.mxu1 %vm1169_vm0, %v1168_v0 }
 0x22b   : > { %1070 = vmatmul.mubr.msk.bf16.vlgmr.msra.gmra.mrb[12].mxu1 %vm316_vm1, %v737_v37 }
 0x2e6   : > { %v1294_v38 = vpop.f32.mrb[0].mxu1 }
 0x2e7   : > { %v1041_v39 = vpop.f32.mrb[1].mxu1 }
 0x2e8   : > { %v440_v40 = vpop.f32.mrb[2].mxu1 }
 0x2e9   : > { %v1042_v41 = vpop.f32.mrb[3].mxu1 }
 0x2ee   : > { %v497_v42 = vpop.f32.mrb[4].mxu1 }
 0x2ef   : > { %v503_v43 = vmul.f32 0.35355338, %v497_v42  ;;  %v1047_v44 = vpop.f32.mrb[5].mxu1 }
 0x2f0   : > { %v500_v45 = vpop.f32.mrb[6].mxu1  ;;  %v393_v44 = vld [vmem:[#allocation4] sm:$0xff] }
 0x2f1   : > { %v1048_v46 = vpop.f32.mrb[7].mxu1  ;;  %v1299_v47 = vsel %vm315_vm3, %v503_v43, -1e+30 }
 0x2f2   : > { %v506_v48 = vsel %vm316_vm1, %v1299_v47, -inf }
 0x2f3   : > { %507 = vmax.xlane.f32.xlu1 %v506_v48 }
 0x2f6   : > { %v640_v49 = vpop.f32.mrb[8].mxu1 }
 0x2f7   : > { %v646_v50 = vmul.f32 0.35355338, %v640_v49  ;;  %v1059_v51 = vpop.f32.mrb[9].mxu1 }
 0x2f8   : > { %v643_v52 = vpop.f32.mrb[10].mxu1  ;;  %v381_v51 = vld [vmem:[#allocation3] sm:$0xff] }
 0x2f9   : > { %v1306_v53 = vsel %vm315_vm3, %v646_v50, -1e+30  ;;  %v1060_v54 = vpop.f32.mrb[11].mxu1 }
 0x2fa   : > { %v649_v55 = vsel %vm316_vm1, %v1306_v53, -inf }
 0x2fb   : > { %650 = vmax.xlane.f32.xlu0 %v649_v55 }
 0x2fe   : > { %v780_v56 = vpop.f32.mrb[12].mxu1 }
 0x2ff   : > { %v786_v57 = vmul.f32 0.35355338, %v780_v56  ;;  %v1071_v58 = vpop.f32.mrb[13].mxu1 }
 0x300   : > { %v783_v59 = vpop.f32.mrb[14].mxu1 }
 0x301   : > { %v1313_v60 = vsel %vm315_vm3, %v786_v57, -1e+30  ;;  %v1072_v61 = vpop.f32.mrb[15].mxu1 }
 0x302   : > { %v789_v62 = vsel %vm316_vm1, %v1313_v60, -inf }
 0x303   : > { %790 = vmax.xlane.f32.xlu1 %v789_v62 }
 0x380   : > { %v508_v2 = vpop.xlane.xlu1 %507 }
 0x381   : > { %v509_v4 = vmax.f32 %v505_v3, %v508_v2 }
 0x383   : > { %v510_v8 = vsub.f32 %v505_v3, %v509_v4  ;;  %595 = vst.msk [vmem:[#allocation2] sm:$0xff] %vm594_vm6, %v509_v4  ;;  %515 = vperm.xlu1 %1117, %v509_v4  }
 0x385   : > { %v511_v6 = vmul.f32 1.442695, %v510_v8 }
 0x387   : > { %1128 = vpow2.f32 %v511_v6  ;;  %540 = vrot.lane.b32.xlu1 %v1007_v5, %s1172_s23 }
 0x388   : > { %v651_v7 = vpop.xlane.xlu0 %650  ;;  %1119 = vset.pattern.permute.xlu1 %v1177_v9  ;;  %1130 = vpow2.f32 %v371_v14 }
 0x38a   : > { %v648_v10 = vld [vmem:[#allocation2] sm:$0xff] }
 0x38b   : > { %v652_v11 = vmax.f32 %v648_v10, %v651_v7 }
 0x38d   : > { %735 = vst.msk [vmem:[#allocation2] sm:$0xff] %vm734_vm7, %v652_v11  ;;  %658 = vperm.xlu0 %1118, %v652_v11   ;;  %v653_v20 = vsub.f32 %v648_v10, %v652_v11 }
 0x38f   : > { %v654_v22 = vmul.f32 1.442695, %v653_v20 }
 0x390   : > { %v791_v13 = vpop.xlane.xlu1 %790 }
 0x391   : > { %v1129_v12 = vpop.eup %1128  ;;  %1121 = vset.pattern.permute.xlu0 %v1175_v63  ;;  %1132 = vpow2.f32 %v654_v22 }
 0x392   : > { %524 = vperm.xlu0 %1121, %v1129_v12   ;;  %v1131_v18 = vpop.eup %1130 }
 0x394   : > { %v1323_v16 = vld [vmem:[#allocation2] sm:$0xff] }
 0x395   : > { %v1326_v17 = vmax.f32 %v1323_v16, %v791_v13 }
 0x396   : > { %1123 = vset.pattern.permute.xlu0 %v1177_v9 }
 0x397   : > { %v793_v19 = vsub.f32 %v1323_v16, %v1326_v17  ;;  %875 = vst.msk [vmem:[#allocation2] sm:$0xff] %vm874_vm8, %v1326_v17  ;;  %798 = vperm.xlu1 %1119, %v1326_v17  }
 0x399   : > { %v794_v59 = vmul.f32 1.442695, %v793_v19 }
 0x39b   : > { %680 = vrot.lane.b32.xlu1 %v1007_v5, %s1173_s24  ;;  %v1133_v23 = vpop.eup %1132 }
 0x39c   : > { %1120 = vset.pattern.permute.xlu1 %v1171_v15 }
 0x39f   : > { %820 = vrot.lane.b32.xlu1 %v1007_v5, %s1174_s25 }
 0x3a3   : > { %384 = vperm.xlu1 %1120, %v1131_v18  }
 0x3a7   : > { %1122 = vset.pattern.permute.xlu1 %v1176_v1 }
 0x3c7   : > { %389 = vadd.xlane.f32.xlu1 %v388_v21 }
 0x3d8   : > { %667 = vperm.xlu1 %1122, %v1133_v23  }
 0x402   : > { %v516_v24 = vpop.permute.xlu1 %515 }
 0x403   : > { %v518_v25 = vsub.f32 %v1299_v47, %v516_v24 }
 0x405   : > { %v519_v26 = vmul.f32 1.442695, %v518_v25 }
 0x406   : > { %v541_v27 = vpop.permute.xlu1 %540 }
 0x407   : > { %1134 = vpow2.f32 %v519_v26  ;;  %v546_v15 = vsel %vm399_vm5, %v541_v27, 0 }
 0x408   : > { %1050 = vmatpush3.bf16.msra.mxu0 %v546_v15 }
 0x409   : > { %1061 = vmatprep.subr.bf16.mxu0 %v1168_v0 }
 0x40c   : > { %v659_v28 = vpop.permute.xlu0 %658 }
 0x40d   : > { %v661_v30 = vsub.f32 %v1306_v53, %v659_v28 }
 0x40f   : > { %v662_v29 = vmul.f32 1.442695, %v661_v30 }
 0x411   : > { %v1135_v31 = vpop.eup %1134  ;;  %1136 = vpow2.f32 %v662_v29 }
 0x412   : > { %v528_v32 = vsel %vm316_vm1, %v1135_v31, 0.0  ;;  %v536_v33 = vpack.c.bf16 %v1135_v31, %v1135_v31 }
 0x413   : > { %529 = vadd.xlane.f32.xlu0 %v528_v32 }
 0x414   : > { %1052 = vmatmul.mubr.msk.bf16.vlgmr.msra.gmra.mrb[4].mxu0 %vm316_vm1, %v536_v33 }
 0x415   : > { %1063 = vmatprep.mubr.msk.bf16.mxu0 %vm1169_vm0, %v1168_v0 }
 0x416   : > { %v799_v34 = vpop.permute.xlu1 %798 }
 0x417   : > { %v801_v35 = vsub.f32 %v1313_v60, %v799_v34 }
 0x419   : > { %v802_v36 = vmul.f32 1.442695, %v801_v35 }
 0x41a   : > { %v681_v37 = vpop.permute.xlu1 %680 }
 0x41b   : > { %v1137_v39 = vpop.eup %1136  ;;  %1138 = vpow2.f32 %v802_v36  ;;  %v686_v40 = vsel %vm399_vm5, %v681_v37, 0 }
 0x41c   : > { %1062 = vmatpush3.bf16.msra.mxu0 %v686_v40  ;;  %v679_v41 = vpack.c.bf16 %v1137_v39, %v1137_v39  ;;  %1140 = vpow2.f32 %v794_v59  ;;  %v671_v9 = vsel %vm316_vm1, %v1137_v39, 0.0 }
 0x41d   : > { %1073 = vmatprep.subr.bf16.mxu0 %v1168_v0 }
 0x41e   : > { %v821_v42 = vpop.permute.xlu1 %820 }
 0x41f   : > { %v826_v43 = vsel %vm399_vm5, %v821_v42, 0  ;;  %1064 = vmatmul.mubr.msk.bf16.vlgmr.msra.gmra.mrb[8].mxu0 %vm316_vm1, %v679_v41 }
 0x420   : > { %1074 = vmatpush3.bf16.msra.mxu0 %v826_v43  ;;  %1075 = vmatprep.mubr.msk.bf16.mxu0 %vm1169_vm0, %v1168_v0  ;;  %v525_v0 = vpop.permute.xlu0 %524 }
 0x422   : > { %v385_v45 = vpop.permute.xlu1 %384 }
 0x423   : > { %v394_v46 = vmul.f32 %v393_v44, %v385_v45  ;;  %v387_v52 = vmul.f32 %v385_v45, %v381_v51 }
 0x425   : > { %v1139_v47 = vpop.eup %1138  ;;  %v443_v48 = vadd.f32 %v1294_v38, %v394_v46 }
 0x426   : > { %v811_v49 = vsel %vm316_vm1, %v1139_v47, 0.0  ;;  %v819_v50 = vpack.c.bf16 %v1139_v47, %v1139_v47  ;;  %v1141_v4 = vpop.eup %1140 }
 0x427   : > { %444 = vst.msk [vmem:[#allocation4] sm:$0xff] %vm316_vm1, %v443_v48  ;;  %812 = vadd.xlane.f32.xlu0 %v811_v49 }
 0x428   : > { %1076 = vmatmul.mubr.msk.bf16.vlgmr.msra.gmra.mrb[12].mxu0 %vm316_vm1, %v819_v50 }
 0x42e   : > { %v534_v11 = vld [vmem:[#allocation4] sm:$0xff] }
 0x42f   : > { %v535_v12 = vmul.f32 %v534_v11, %v525_v0 }
 0x454   : > { %v390_v53 = vpop.xlane.xlu1 %389 }
 0x455   : > { %v391_v54 = vadd.f32 %v390_v53, %v387_v52 }
 0x457   : > { %392 = vst.msk [vmem:[#allocation3] sm:$0xff] %vm316_vm1, %v391_v54 }
 0x458   : > { %v668_v10 = vpop.permute.xlu1 %667 }
 0x45e   : > { %v521_v55 = vld [vmem:[#allocation3] sm:$0xff] }
 0x45f   : > { %v527_v56 = vmul.f32 %v525_v0, %v521_v55 }
 0x4a0   : > { %v530_v57 = vpop.xlane.xlu0 %529 }
 0x4a1   : > { %v531_v38 = vadd.f32 %v530_v57, %v527_v56 }
 0x4a3   : > { %533 = vst.msk [vmem:[#allocation3] sm:$0xff] %vm532_vm10, %v531_v38 }
 0x4aa   : > { %v664_v21 = vld [vmem:[#allocation3] sm:$0xff] }
 0x4ab   : > { %v670_v22 = vmul.f32 %v668_v10, %v664_v21 }
 0x4b4   : > { %v813_v16 = vpop.xlane.xlu0 %812 }
 0x4e7   : > { %v582_v58 = vpop.f32.mrb[4].mxu0 }
 0x4e8   : > { %589 = vrot.lane.b32.xlu1 %v582_v58, %s1178_s29  ;;  %v1053_v60 = vpop.f32.mrb[5].mxu0 }
 0x4e9   : > { %v585_v61 = vpop.f32.mrb[6].mxu0 }
 0x4ea   : > { %v1054_v62 = vpop.f32.mrb[7].mxu0 }
 0x4f2   : > { %v722_v63 = vpop.f32.mrb[8].mxu0 }
 0x4f3   : > { %729 = vrot.lane.b32.xlu0 %v722_v63, %s1179_s30  ;;  %v1065_v1 = vpop.f32.mrb[9].mxu0 }
 0x4f4   : > { %v725_v2 = vpop.f32.mrb[10].mxu0 }
 0x4f5   : > { %v1066_v3 = vpop.f32.mrb[11].mxu0 }
 0x4f7   : > { %807 = vperm.xlu0 %1123, %v1141_v4  }
 0x4fb   : > { %v862_v5 = vpop.f32.mrb[12].mxu0 }
 0x4fc   : > { %v1077_v8 = vpop.f32.mrb[13].mxu0 }
 0x4fd   : > { %v865_v6 = vpop.f32.mrb[14].mxu0 }
 0x4fe   : > { %v1078_v7 = vpop.f32.mrb[15].mxu0 }
 0x50c   : > { %672 = vadd.xlane.f32.xlu1 %v671_v9 }
 0x51d   : > { %869 = vrot.lane.b32.xlu1 %v862_v5, %s1180_s4 }
 0x55a   : > { %v590_v13 = vpop.permute.xlu1 %589 }
 0x55b   : > { %v592_v14 = vadd.f32 %v590_v13, %v535_v12 }
 0x55d   : > { %593 = vst.msk [vmem:[#allocation4] sm:$0xff] %vm532_vm10, %v592_v14 }
 0x564   : > { %v677_v17 = vld [vmem:[#allocation4] sm:$0xff] }
 0x565   : > { %v678_v19 = vmul.f32 %v677_v17, %v668_v10  ;;  %v730_v18 = vpop.permute.xlu0 %729 }
 0x567   : > { %v732_v20 = vadd.f32 %v730_v18, %v678_v19 }
 0x569   : > { %733 = vst.msk [vmem:[#allocation4] sm:$0xff] %vm675_vm11, %v732_v20 }
 0x570   : > { %v817_v26 = vld [vmem:[#allocation4] sm:$0xff] }
 0x576   : > { %v808_v23 = vpop.permute.xlu0 %807 }
 0x577   : > { %v818_v27 = vmul.f32 %v817_v26, %v808_v23 }
 0x599   : > { %v673_v24 = vpop.xlane.xlu1 %672 }
 0x59a   : > { %v674_v25 = vadd.f32 %v673_v24, %v670_v22 }
 0x59c   : > { %676 = vst.msk [vmem:[#allocation3] sm:$0xff] %vm675_vm11, %v674_v25 }
 0x59d   : > { %v870_v15 = vpop.permute.xlu1 %869 }
 0x59e   : > { %v872_v28 = vadd.f32 %v870_v15, %v818_v27 }
 0x5a0   : > { %873 = vst.msk [vmem:[#allocation4] sm:$0xff] %vm815_vm12, %v872_v28 }
 0x5a3   : > { %v804_v30 = vld [vmem:[#allocation3] sm:$0xff] }
 0x5a4   : > { %v810_v29 = vmul.f32 %v808_v23, %v804_v30 }
 0x5a6   : > { %v814_v31 = vadd.f32 %v813_v16, %v810_v29 }
 0x5a7   : > { %v879_v34 = vld [vmem:[#allocation4] sm:$0xff] }
 0x5a8   : > { %816 = vst.msk [vmem:[#allocation3] sm:$0xff] %vm815_vm12, %v814_v31 }
 0x5af   : > { %v880_v32 = vld [vmem:[#allocation3] sm:$0xff] }
 0x5b0   : > { %1142 = vrcp.f32 %v880_v32 }
 0x5ba   : > { %v1143_v33 = vpop.eup %1142 }
 0x5bb   : > { %v882_v35 = vmul.f32 %v1143_v33, %v879_v34 }
 0x5bd   : > { %v883_v36 = vpack.c.bf16 %v882_v35, %v882_v35 }
 0x5bf   : > { %885 = vst.msk [vmem:[%s287_s7] sm:$0xf] %vm884_vm13, %v883_v36 }
 0x5c0 PF: > { %s13_s14 = sadd.s32 1, %s1166_s14   ;;  %s1382_s12 = smov %s1162_s13 }
 0x5c1   : > { %p10_p5 = scmp.ge.s32.totalorder %s13_s14, 4   ;;  %s1383_s13 = smov %s1385_s15 }
 0x5c3   :  { %12 = sbr.rel (!%p10_p5) target bundleno = 2 (0x2), region = 80 }

// kernel: gpt2_resv_forward.11
= control target key start
LH: loop header
LB: loop body
LE: loop exit
PB: predicated region body
PF: predicated region fallthrough
CT: control target
= control target key end

     0   :  { %s831_s27 = smov 0   ;;  %s833_s28 = smov 0   ;;  %s897_s0 = inlined_call_operand.vmem [shape: f32[2,8,32], index: 0, kind: input, shape index: {}]   ;;  %s898_s1 = inlined_call_operand.vmem [shape: bf16[2,8,32], index: 1, kind: input, shape index: {}]   ;;  %s899_s2 = inlined_call_operand.vmem [shape: f32[1,32], index: 2, kind: input, shape index: {}]   ;;  %s900_s3 = inlined_call_operand.vmem [shape: f32[1,32], index: 3, kind: input, shape index: {}]   ;;  %s901_s4 = inlined_call_operand.vmem [shape: bf16[32,96], index: 4, kind: input, shape index: {}]   ;;  %s902_s5 = inlined_call_operand.vmem [shape: f32[1,96], index: 5, kind: input, shape index: {}]   ;;  %s903_s6 = inlined_call_operand.vmem [shape: bf16[2,8,32], index: 6, kind: output, shape index: {0}]   ;;  %s904_s7 = inlined_call_operand.vmem [shape: bf16[2,8,32], index: 7, kind: output, shape index: {1}]   ;;  %s905_s8 = inlined_call_operand.vmem [shape: bf16[2,8,32], index: 8, kind: output, shape index: {2}]  }
   0x1   :  { %s835_s29 = smov 0  }
   0x2 LB: > { %s31_s30 = sadd.s32 1, %s776_s28  ;;  %p697_p0 = scmp.ge.s32.totalorder %s780_s29, 1  ;;  %s780_s29 = sphi %s835_s29, %s19_s29   ;;  %s776_s28 = sphi %s833_s28, %s907_s28   ;;  %s772_s27 = sphi %s831_s27, %s906_s27  }
   0x3   : > { %p33_p1 = scmp.ge.s32.totalorder %s31_s30, 2  ;;  %p303_p2 = scmp.lt.s32.totalorder %s780_s29, 3 }
   0x5   : > { %s909_s30 = smov (%p33_p1, %s31_s30), 0  ;;  %p304_p3 = pnand %p697_p0, %p303_p2 }
   0x6   : > { %p362_p4 = scmp.lt.s32.totalorder (!%p304_p3), %s772_s27, 1  ;;  %vm401_vm0 = vcmask (!%p304_p3), 261120   ;;  %v754_v7 = vld [vmem:[%s901_s4] sm:$0xff] (!%p304_p3)   ;;  %v782_v8 = vmov (!%p304_p3), 0.0   ;;  %vm783_vm1 = vmmov (!%p304_p3), 0   ;;  %v755_v9 = vld [vmem:[%s901_s4 + $0x8] sm:$0xff] (!%p304_p3)  }
   0x7   : > { %307 = sbr.rel (%p304_p3) target bundleno = 667 (0x29b), region = 44  ;;  %718 = vmatprep.subr.bf16.mxu0 (!%p304_p3), %v782_v8  ;;  %722 = vmatprep.mubr.msk.bf16.mxu0 (!%p304_p3), %vm783_vm1, %v782_v8  ;;  %s784_s21 = smov (!%p304_p3), 64   ;;  %v703_v16 = vld [vmem:[%s899_s2] ss:$0 sm:$0xff] (!%p304_p3)  ;;  %vm498_vm2 = vcmask (!%p304_p3), 257024  }
   0x8   : > { %719 = vmatpush3.bf16.msra.mxu0 (!%p304_p3), %v754_v7  ;;  %v704_v18 = vld [vmem:[%s900_s3] ss:$0 sm:$0xff] (!%p304_p3) }
   0x9   : > { %720 = vmatprep.subr.bf16.mxu0 (!%p304_p3), %v782_v8  ;;  %v705_v22 = vld [vmem:[%s902_s5] ss:$0 sm:$0xff] (!%p304_p3) }
   0xc   : > { %721 = vmatpush3.bf16.msra.mxu0 (!%p304_p3), %v755_v9 }
   0xe   : > { %s911_s27 = smov (!%p362_p4, %s772_s27), 1 }
   0xf   : > { %s698_s9 = sshll.u32 %s911_s27, 3  ;;  %s860_s17 = sshll.u32 %s911_s27, 2 }
  0x10   : > { %s368_s12 = scalar_lea.vmem %s897_s0, %s698_s9  ;;  %s375_s20 = scalar_lea.vmem %s898_s1, %s860_s17 }
  0x11   : > { %v398_v0 = vld [vmem:[%s368_s12] sm:$0xff]  ;;  %s382_s11 = scalar_lea.vmem %s903_s6, %s860_s17  ;;  %s785_s12 = smov 96  }
  0x12   : > { %v402_v1 = vsel %vm401_vm0, %v398_v0, 0.0  ;;  %v507_v10 = vld [vmem:[%s375_s20] sm:$0xf]  ;;  %s389_s15 = scalar_lea.vmem %s904_s7, %s860_s17  ;;  %s396_s19 = scalar_lea.vmem %s905_s8, %s860_s17 }
  0x13   : > { %403 = vadd.xlane.f32.xlu0 %v402_v1  ;;  %v508_v11 = vunpack.c.l.bf16 %v507_v10 }
  0x15   : > { %510 = vrot.lane.b32.xlu1 %v508_v11, %s784_s21 }
  0x87   : > { %v511_v24 = vpop.permute.xlu1 %510 }
  0xa0   : > { %v404_v2 = vpop.xlane.xlu0 %403 }
  0xa1   : > { %v406_v3 = vmul.f32 0.03125, %v404_v2 }
  0xa3   : > { %v407_v4 = vsub.f32 %v398_v0, %v406_v3 }
  0xa5   : > { %v408_v5 = vmul.f32 %v407_v4, %v407_v4 }
  0xa7   : > { %v409_v6 = vsel %vm401_vm0, %v408_v5, 0.0 }
  0xa8   : > { %410 = vadd.xlane.f32.xlu0 %v409_v6 }
 0x135   : > { %v411_v12 = vpop.xlane.xlu0 %410 }
 0x136   : > { %v412_v13 = vmul.f32 0.03125, %v411_v12 }
 0x138   : > { %v413_v14 = vadd.f32 1e-05, %v412_v13 }
 0x13a   : > { %756 = vrsqrt.f32 %v413_v14 }
 0x144   : > { %v757_v15 = vpop.eup %756 }
 0x145   : > { %v415_v17 = vmul.f32 %v757_v15, %v407_v4 }
 0x147   : > { %v422_v19 = vmul.f32 %v703_v16, %v415_v17 }
 0x149   : > { %v429_v20 = vadd.f32 %v704_v18, %v422_v19 }
 0x14b   : > { %v430_v21 = vpack.c.bf16 %v429_v20, %v429_v20 }
 0x14d   : > { %723 = vmatmul.mubr.msk.bf16.vlgmr.msra.gmra.mrb[0].mxu0 %vm401_vm0, %v430_v21 }
 0x220   : > { %v491_v23 = vpop.f32.mrb[0].mxu0 }
 0x221   : > { %v492_v25 = vadd.f32 %v705_v22, %v491_v23  ;;  %v724_v26 = vpop.f32.mrb[1].mxu0 }
 0x222   : > { %v494_v27 = vpop.f32.mrb[2].mxu0 }
 0x223   : > { %v497_v28 = vpack.c.bf16 %v492_v25, %v492_v25  ;;  %v513_v29 = vadd.f32 %v511_v24, %v492_v25  ;;  %v725_v30 = vpop.f32.mrb[3].mxu0 }
 0x225   : > { %v714_v31 = vpack.c.bf16 %v513_v29, %v513_v29  ;;  %503 = vrot.lane.b32.xlu1 %v497_v28, %s785_s12  ;;  %499 = vst.msk [vmem:[%s382_s11] sm:$0xf] %vm498_vm2, %v497_v28 }
 0x227   : > { %518 = vrot.lane.b32.xlu0 %v714_v31, %s784_s21 }
 0x297   : > { %v504_v32 = vpop.permute.xlu1 %503 }
 0x298   : > { %506 = vst.msk [vmem:[%s389_s15] sm:$0xf] %vm498_vm2, %v504_v32 }
 0x299   : > { %v519_v33 = vpop.permute.xlu0 %518 }
 0x29a   : > { %521 = vst.msk [vmem:[%s396_s19] sm:$0xf] %vm498_vm2, %v519_v33 }
 0x29b PF: > { %s19_s29 = sadd.s32 1, %s780_s29   ;;  %s906_s27 = smov %s776_s28 }
 0x29c   : > { %p16_p5 = scmp.ge.s32.totalorder %s19_s29, 4   ;;  %s907_s28 = smov %s909_s30 }
 0x29e   :  { %18 = sbr.rel (!%p16_p5) target bundleno = 2 (0x2), region = 101 }

// kernel: gpt2_resv_forward.14
= control target key start
LH: loop header
LB: loop body
LE: loop exit
PB: predicated region body
PF: predicated region fallthrough
CT: control target
= control target key end

     0   :  { %vm18_vm0 = vcmask 261120   ;;  %vm70_vm1 = vcmask 257024   ;;  %s129_s0 = inlined_call_operand.vmem [shape: f32[16,32], index: 0, kind: input, shape index: {}]   ;;  %s130_s1 = inlined_call_operand.vmem [shape: f32[1,32], index: 1, kind: input, shape index: {}]   ;;  %s131_s2 = inlined_call_operand.vmem [shape: f32[1,32], index: 2, kind: input, shape index: {}]   ;;  %s132_s3 = inlined_call_operand.vmem [shape: bf16[16,32], index: 3, kind: output, shape index: {}]  }
   0x1   :  { %v14_v0 = vld [vmem:[%s129_s0] sm:$0xff]  ;;  %v15_v1 = vld [vmem:[%s129_s0 + $0x8] sm:$0xff] }
   0x2   :  { %v19_v2 = vsel %vm18_vm0, %v14_v0, 0.0  ;;  %v22_v3 = vsel %vm18_vm0, %v15_v1, 0.0  ;;  %v77_v21 = vld [vmem:[%s130_s1] ss:$0 sm:$0xff] }
   0x3   :  { %20 = vadd.xlane.f32.xlu0 %v19_v2  ;;  %v78_v23 = vld [vmem:[%s131_s2] ss:$0 sm:$0xff] }
   0x7   :  { %23 = vadd.xlane.f32.xlu0 %v22_v3 }
  0x90   :  { %v21_v4 = vpop.xlane.xlu0 %20 }
  0x91   :  { %v26_v5 = vmul.f32 0.03125, %v21_v4 }
  0x93   :  { %v28_v6 = vsub.f32 %v14_v0, %v26_v5 }
  0x94   :  { %v24_v7 = vpop.xlane.xlu0 %23 }
  0x95   :  { %v27_v8 = vmul.f32 0.03125, %v24_v7  ;;  %v30_v9 = vmul.f32 %v28_v6, %v28_v6 }
  0x97   :  { %v29_v10 = vsub.f32 %v15_v1, %v27_v8  ;;  %v32_v11 = vsel %vm18_vm0, %v30_v9, 0.0 }
  0x98   :  { %33 = vadd.xlane.f32.xlu1 %v32_v11 }
  0x99   :  { %v31_v12 = vmul.f32 %v29_v10, %v29_v10 }
  0x9b   :  { %v35_v13 = vsel %vm18_vm0, %v31_v12, 0.0 }
  0x9c   :  { %36 = vadd.xlane.f32.xlu1 %v35_v13 }
 0x125   :  { %v34_v14 = vpop.xlane.xlu1 %33 }
 0x126   :  { %v38_v15 = vmul.f32 0.03125, %v34_v14 }
 0x128   :  { %v40_v16 = vadd.f32 1e-05, %v38_v15 }
 0x129   :  { %v37_v17 = vpop.xlane.xlu1 %36 }
 0x12a   :  { %83 = vrsqrt.f32 %v40_v16  ;;  %v39_v18 = vmul.f32 0.03125, %v37_v17 }
 0x12c   :  { %v41_v19 = vadd.f32 1e-05, %v39_v18 }
 0x12e   :  { %85 = vrsqrt.f32 %v41_v19 }
 0x134   :  { %v84_v20 = vpop.eup %83 }
 0x135   :  { %v44_v22 = vmul.f32 %v84_v20, %v28_v6 }
 0x137   :  { %v52_v24 = vmul.f32 %v77_v21, %v44_v22 }
 0x138   :  { %v86_v25 = vpop.eup %85 }
 0x139   :  { %v60_v26 = vadd.f32 %v78_v23, %v52_v24  ;;  %v45_v27 = vmul.f32 %v86_v25, %v29_v10 }
 0x13b   :  { %v81_v28 = vpack.c.bf16 %v60_v26, %v60_v26  ;;  %v53_v29 = vmul.f32 %v77_v21, %v45_v27 }
 0x13d   :  { %71 = vst.msk [vmem:[%s132_s3] sm:$0xf] %vm70_vm1, %v81_v28  ;;  %v61_v30 = vadd.f32 %v78_v23, %v53_v29 }
 0x13f   :  { %v82_v31 = vpack.c.bf16 %v61_v30, %v61_v30 }
 0x141   :  { %72 = vst.msk [vmem:[%s132_s3 + $0x4] sm:$0xf] %vm70_vm1, %v82_v31 }

// kernel: gpt2_resv_forward.15
= control target key start
LH: loop header
LB: loop body
LE: loop exit
PB: predicated region body
PF: predicated region fallthrough
CT: control target
= control target key end

     0   :  { %v181_v1 = vmov 0.0   ;;  %vm48_vm0 = vcmask 261120   ;;  %vm182_vm1 = vmmov 0   ;;  %s233_s0 = inlined_call_operand.vmem [shape: bf16[16,32], index: 0, kind: input, shape index: {}]   ;;  %s234_s1 = inlined_call_operand.vmem [shape: bf16[64,32], index: 1, kind: input, shape index: {}]   ;;  %s235_s2 = inlined_call_operand.hbm [shape: f32[16,64], index: 2, kind: output, shape index: {}]  }
   0x1   :  { %v152_v0 = vld [vmem:[%s234_s1] sm:$0xff]   ;;  %135 = vmatprep.subr.bf16.mxu0 %v181_v1  ;;  %v153_v3 = vld [vmem:[%s234_s1 + $0x8] sm:$0xff]   ;;  %143 = vmatprep.mubr.msk.bf16.mxu0 %vm182_vm1, %v181_v1 }
   0x2   :  { %v53_v2 = vsel %vm48_vm0, %v152_v0, 0 }
   0x3   :  { %136 = vmatpush3.bf16.xpose.msra.mxu0 %v53_v2 }
   0x4   :  { %137 = vmatprep.subr.bf16.mxu0 %v181_v1 }
   0x5   :  { %7 = vsyncpa [#allocation3], 0  ;;  %v56_v4 = vsel %vm48_vm0, %v153_v3, 0  ;;  %v154_v5 = vld [vmem:[%s234_s1 + $0x10] sm:$0xff]   ;;  %v155_v7 = vld [vmem:[%s234_s1 + $0x18] sm:$0xff]   ;;  %s183_s19 = smov [#allocation2]  }
   0x6   :  { %v59_v6 = vsel %vm48_vm0, %v154_v5, 0  ;;  %v62_v8 = vsel %vm48_vm0, %v155_v7, 0  ;;  %v156_v9 = vld [vmem:[%s233_s0] sm:$0xff]   ;;  %s113_s20 = sshll.u32 %s183_s19, 4  ;;  %vm105_vm2 = vcmask 523264   ;;  %s114_s20 = int_to_ptr.vmem [resolvable:$true] %s113_s20 }
   0x7   :  { %s157_s1 = scalar_lea.vmem %s114_s20, 256  ;;  %p162_p1 = scmp.lt.s32.totalorder %s114_s20, %s114_s20 }
   0x8   :  { %p158_p0 = scmp.ne.s32.totalorder %s114_s20, %s157_s1  ;;  %p163_p2 = scmp.lt.s32.totalorder %s157_s1, %s157_s1 }
   0xa   :  { %p164_p3 = por %p163_p2, %p162_p1 }
   0xb   :  { %138 = vmatpush3.bf16.xpose.msra.mxu0 %v56_v4 }
   0xc   :  { %139 = vmatprep.subr.bf16.mxu0 %v181_v1  ;;  %p165_p4 = pnand %p164_p3, %p158_p0 }
  0x13   :  { %140 = vmatpush3.bf16.xpose.msra.mxu0 %v59_v6 }
  0x14   :  { %141 = vmatprep.subr.bf16.mxu0 %v181_v1 }
  0x1b   :  { %142 = vmatpush3.bf16.xpose.msra.mxu0 %v62_v8 }
  0x22   :  { %144 = vmatmul.mubr.msk.bf16.vlgmr.msra.gmra.mrb[0].mxu0 %vm48_vm0, %v156_v9 }
  0xf5   :  { %v98_v10 = vpop.f32.mrb[0].mxu0 }
  0xf6   :  { %106 = vst.msk [vmem:[#allocation2] sm:$0xff] %vm105_vm2, %v98_v10  ;;  %v145_v11 = vpop.f32.mrb[1].mxu0 }
  0xf7   :  { %v101_v12 = vpop.f32.mrb[2].mxu0 }
  0xf8   :  { %107 = vst.msk [vmem:[#allocation2 + $0x8] sm:$0xff] %vm105_vm2, %v101_v12  ;;  %v146_v13 = vpop.f32.mrb[3].mxu0 }
  0xf9   :  { %168 = shalt.err (!%p165_p4)
}
  0xfa   :  { %s169_s22 = scalar_lea.hbm %s235_s2, 256 }
  0xfb   :  { %p170_p5 = scmp.ne.s32.totalorder %s235_s2, %s169_s22  ;;  %p173_p6 = scmp.lt.u32.totalorder %s169_s22, %s235_s2 }
  0xfd   :  { %p175_p7 = pnand %p173_p6, %p170_p5 }
  0xff   :  { %178 = shalt.err (!%p175_p7)
}
 0x100   :  { %s184_s27 = smov 128   ;;  %s185_s28 = smov 8  }
 0x101   :  { %119 = dma.vmem_to_hbm [thread:$0]  %s114_s20, 256, %s235_s2, [#allocation3], %s184_s27, %s184_s27, %s185_s28  }
 0x102   :  { %179 = dma.done.wait [#allocation3], 256  }
 0x103   :  { %180 = vsyncadd [#allocation3], 4294967040 }
 0x104   :  { %123 = vsyncpa [#allocation3], 1 }

</bundles_post_ra>
